<compile_context>
chip_gen: v5e
topology: v5e:2x2
jax: 0.10.0
libtpu: 0.0.40
codegen_flags: <defaults>
</compile_context>

<pallas_src>
import functools

import jax
import jax.numpy as jnp
from jax.experimental import pallas as pl
from jax.experimental.pallas import tpu as pltpu

K_IN = 28 * 28        # 784 (unpadded; block == full last dim)
H1, H2, H3 = 512, 256, 128
H4 = 32
H4_PAD = 128          # pad 32 -> 128 lanes so layer-4/5 math + final store are lane-dense


def _round_up(x, m):
    return ((x + m - 1) // m) * m


def encoder_kernel(x_ref,
                   w1_ref, b1_ref,
                   w2_ref, b2_ref,
                   w3_ref, b3_ref,
                   w4_ref, b4_ref,
                   w5_ref, b5_ref,
                   o_ref):
    """One batch-tile of the fused encoder.

    x arrives f32 and is cast to bf16 in-kernel (cast hides under the MXU).
    Weights are bf16, biases f32.  Matmuls run on the MXU in bf16 with f32
    accumulation; bias/activation math stays in f32; activations are re-cast
    to bf16 before the next matmul.  Output is stored bf16, lane-dense.
    """
    h = x_ref[...].astype(jnp.bfloat16)  # (TB, 784)

    h = jnp.dot(h, w1_ref[...], preferred_element_type=jnp.float32) + b1_ref[...]
    h = jnp.maximum(h, 0.0).astype(jnp.bfloat16)

    h = jnp.dot(h, w2_ref[...], preferred_element_type=jnp.float32) + b2_ref[...]
    h = jnp.maximum(h, 0.0).astype(jnp.bfloat16)

    h = jnp.dot(h, w3_ref[...], preferred_element_type=jnp.float32) + b3_ref[...]
    h = jnp.maximum(h, 0.0).astype(jnp.bfloat16)

    h = jnp.dot(h, w4_ref[...], preferred_element_type=jnp.float32) + b4_ref[...]
    h = jnp.maximum(h, 0.0).astype(jnp.bfloat16)

    h = jnp.dot(h, w5_ref[...], preferred_element_type=jnp.float32) + b5_ref[...]
    o_ref[...] = jnp.tanh(h).astype(o_ref.dtype)  # (TB, LAT_PAD) bf16


def init_linear(key, fan_in, fan_out):
    """Mimics torch.nn.Linear default init: U[-1/sqrt(fan_in), +1/sqrt(fan_in)].

    Stored as (in, out) so the kernel computes x @ W + b (== torch's x @ W.T)."""
    kw, kb = jax.random.split(key)
    bound = 1.0 / jnp.sqrt(jnp.float32(fan_in))
    w = jax.random.uniform(kw, (fan_in, fan_out), jnp.float32, -bound, bound)
    b = jax.random.uniform(kb, (1, fan_out), jnp.float32, -bound, bound)
    return w, b


def init_encoder_params(key, latent):
    dims = [(K_IN, H1), (H1, H2), (H2, H3), (H3, H4), (H4, latent)]
    keys = jax.random.split(key, len(dims))
    return tuple(init_linear(k, fi, fo) for k, (fi, fo) in zip(keys, dims))


def prepare_encoder_params(params):
    """Lane-pad only the narrow tail layers and cast weights to bf16 (once)."""
    (w1, b1), (w2, b2), (w3, b3), (w4, b4), (w5, b5) = params
    latent = w5.shape[1]
    lat_pad = max(128, _round_up(latent, 128))

    w4p = jnp.pad(w4, ((0, 0), (0, H4_PAD - H4)))                        # (128, 128)
    b4p = jnp.pad(b4, ((0, 0), (0, H4_PAD - H4)))                        # (1, 128)
    w5p = jnp.pad(w5, ((0, H4_PAD - H4), (0, lat_pad - latent)))         # (128, lat_pad)
    b5p = jnp.pad(b5, ((0, 0), (0, lat_pad - latent)))                   # (1, lat_pad)

    bf = lambda w: w.astype(jnp.bfloat16)
    return ((bf(w1), b1), (bf(w2), b2), (bf(w3), b3),
            (bf(w4p), b4p), (bf(w5p), b5p))


@functools.partial(jax.jit, static_argnames=("latent",))
def encoder_forward(x_nchw, prepared_params, *, latent):
    """x_nchw: (B, 1, 28, 28) float32 -> (B, latent) float32."""
    B = x_nchw.shape[0]
    (w1, b1), (w2, b2), (w3, b3), (w4, b4), (w5, b5) = prepared_params
    lat_pad = w5.shape[1]

    # Batch tiling:
    #  * small batches: one sublane-aligned tile (single grid step, no
    #    per-step pipeline overhead).
    #  * large batches: 512-1024-row tiles to amortize the ~0.35us/step
    #    overhead, capped so the grid keeps >= 2 steps so the "parallel"
    #    batch axis can shard across the 2 TensorCores of a v7x chip.
    if B >= 512:
        tb = min(1024, _round_up((B + 1) // 2, 128))
    else:
        tb = _round_up(max(B, 1), 8)
    b_pad = _round_up(B, tb)

    # Flatten only (reshape is free); no lane pad, no dtype pre-pass.  Row pad
    # only when the batch is not a tile multiple (often a no-op).
    x_flat = x_nchw.reshape(B, -1).astype(jnp.float32)     # (B, 784)
    if b_pad != B:
        x_flat = jnp.pad(x_flat, ((0, b_pad - B), (0, 0)))

    weights = (w1, b1, w2, b2, w3, b3, w4, b4, w5, b5)

    def resident(arr):
        # Constant index_map: fetched once, stays VMEM-resident across steps.
        return pl.BlockSpec(arr.shape, lambda i: (0, 0))

    in_specs = [pl.BlockSpec((tb, K_IN), lambda i: (i, 0))] + [resident(a) for a in weights]
    out_specs = pl.BlockSpec((tb, lat_pad), lambda i: (i, 0))

    flops = 2 * b_pad * (K_IN * H1 + H1 * H2 + H2 * H3 + H3 * H4_PAD + H4_PAD * lat_pad)
    weight_bytes = sum(int(a.size) * a.dtype.itemsize for a in weights)
    bytes_accessed = b_pad * K_IN * 4 + weight_bytes + b_pad * lat_pad * 2

    out = pl.pallas_call(
        encoder_kernel,
        out_shape=jax.ShapeDtypeStruct((b_pad, lat_pad), jnp.bfloat16),
        grid=(b_pad // tb,),
        in_specs=in_specs,
        out_specs=out_specs,
        compiler_params=pltpu.CompilerParams(
            dimension_semantics=("parallel",),
            vmem_limit_bytes=48 * 1024 * 1024,
        ),
        cost_estimate=pl.CostEstimate(
            flops=flops,
            transcendentals=b_pad * lat_pad,
            bytes_accessed=bytes_accessed,
        ),
    )(x_flat, *weights)

    return out[:B, :latent].astype(jnp.float32)


def reference_forward(x_nchw, params):
    """Pure-JAX f32 reference matching the PyTorch module."""
    h = x_nchw.reshape(x_nchw.shape[0], -1)
    for i, (w, b) in enumerate(params):
        h = h @ w + b
        h = jnp.tanh(h) if i == len(params) - 1 else jnp.maximum(h, 0.0)
    return h


if __name__ == "__main__":
    key = jax.random.PRNGKey(0)
    k_params, k_x = jax.random.split(key)

    latent = 16
    params = init_encoder_params(k_params, latent)
    prepared = prepare_encoder_params(params)

    # Small deterministic input, NCHW like PyTorch: (B=2, C=1, H=28, W=28)
    x = jax.random.normal(k_x, (2, 1, 28, 28), dtype=jnp.float32)

    out = encoder_forward(x, prepared, latent=latent)
    out = jax.block_until_ready(out)

    ref = reference_forward(x, params)
    assert out.shape == (2, latent), out.shape
    # bf16 matmuls (f32 accumulation) + bf16 output store vs f32 reference.
    assert jnp.allclose(out, ref, atol=2e-2, rtol=2e-2), "mismatch vs reference"

    print("KERNEL_OK")
</pallas_src>

<mosaic_0001>
module attributes {stable_mosaic.version = 11 : i64} {
  func.func @encoder_kernel(%arg0: i32, %arg1: memref<8x784xf32, #tpu.memory_space<vmem>>, %arg2: memref<784x512xbf16, #tpu.memory_space<vmem>>, %arg3: memref<1x512xf32, #tpu.memory_space<vmem>>, %arg4: memref<512x256xbf16, #tpu.memory_space<vmem>>, %arg5: memref<1x256xf32, #tpu.memory_space<vmem>>, %arg6: memref<256x128xbf16, #tpu.memory_space<vmem>>, %arg7: memref<1x128xf32, #tpu.memory_space<vmem>>, %arg8: memref<128x128xbf16, #tpu.memory_space<vmem>>, %arg9: memref<1x128xf32, #tpu.memory_space<vmem>>, %arg10: memref<128x128xbf16, #tpu.memory_space<vmem>>, %arg11: memref<1x128xf32, #tpu.memory_space<vmem>>, %arg12: memref<8x128xbf16, #tpu.memory_space<vmem>>) attributes {dimension_semantics = [#tpu.dimension_semantics<parallel>], iteration_bounds = array<i64: 1>, scalar_prefetch = 0 : i64, scratch_operands = 0 : i64, tpu.core_type = #tpu.core_type<tc>, window_params = [{transform_indices = @transform_0, window_bounds = array<i64: 8, 784>}, {pipeline_mode = #tpu.pipeline_mode<synchronous>, transform_indices = @transform_1, window_bounds = array<i64: 784, 512>}, {pipeline_mode = #tpu.pipeline_mode<synchronous>, transform_indices = @transform_2, window_bounds = array<i64: 1, 512>}, {pipeline_mode = #tpu.pipeline_mode<synchronous>, transform_indices = @transform_3, window_bounds = array<i64: 512, 256>}, {pipeline_mode = #tpu.pipeline_mode<synchronous>, transform_indices = @transform_4, window_bounds = array<i64: 1, 256>}, {pipeline_mode = #tpu.pipeline_mode<synchronous>, transform_indices = @transform_5, window_bounds = array<i64: 256, 128>}, {pipeline_mode = #tpu.pipeline_mode<synchronous>, transform_indices = @transform_6, window_bounds = array<i64: 1, 128>}, {pipeline_mode = #tpu.pipeline_mode<synchronous>, transform_indices = @transform_7, window_bounds = array<i64: 128, 128>}, {pipeline_mode = #tpu.pipeline_mode<synchronous>, transform_indices = @transform_8, window_bounds = array<i64: 1, 128>}, {pipeline_mode = #tpu.pipeline_mode<synchronous>, transform_indices = @transform_9, window_bounds = array<i64: 128, 128>}, {pipeline_mode = #tpu.pipeline_mode<synchronous>, transform_indices = @transform_10, window_bounds = array<i64: 1, 128>}, {transform_indices = @transform_11, window_bounds = array<i64: 8, 128>}]} {
    %c0 = arith.constant 0 : index
    %c0_0 = arith.constant 0 : index
    %0 = vector.load %arg1[%c0, %c0_0] : memref<8x784xf32, #tpu.memory_space<vmem>>, vector<8x784xf32>
    %1 = arith.truncf %0 : vector<8x784xf32> to vector<8x784xbf16>
    %c0_1 = arith.constant 0 : index
    %c0_2 = arith.constant 0 : index
    %2 = vector.load %arg2[%c0_1, %c0_2] : memref<784x512xbf16, #tpu.memory_space<vmem>>, vector<784x512xbf16>
    %cst = arith.constant dense<0.000000e+00> : vector<8x512xf32>
    %3 = tpu.matmul %1, %2, %cst {dimension_numbers = #tpu.dot_dimension_numbers<[1], [0], [0], [1], [0, 0, 1, 1], [], []>} : vector<8x784xbf16>, vector<784x512xbf16>, vector<8x512xf32> -> vector<8x512xf32>
    %c0_3 = arith.constant 0 : index
    %c0_4 = arith.constant 0 : index
    %4 = vector.load %arg3[%c0_3, %c0_4] : memref<1x512xf32, #tpu.memory_space<vmem>>, vector<1x512xf32>
    %5 = vector.broadcast %4 : vector<1x512xf32> to vector<8x512xf32>
    %6 = arith.addf %3, %5 : vector<8x512xf32>
    %cst_5 = arith.constant 0.000000e+00 : f32
    %7 = vector.broadcast %cst_5 : f32 to vector<8x512xf32>
    %8 = arith.maximumf %6, %7 : vector<8x512xf32>
    %9 = arith.truncf %8 : vector<8x512xf32> to vector<8x512xbf16>
    %c0_6 = arith.constant 0 : index
    %c0_7 = arith.constant 0 : index
    %10 = vector.load %arg4[%c0_6, %c0_7] : memref<512x256xbf16, #tpu.memory_space<vmem>>, vector<512x256xbf16>
    %cst_8 = arith.constant dense<0.000000e+00> : vector<8x256xf32>
    %11 = tpu.matmul %9, %10, %cst_8 {dimension_numbers = #tpu.dot_dimension_numbers<[1], [0], [0], [1], [0, 0, 1, 1], [], []>} : vector<8x512xbf16>, vector<512x256xbf16>, vector<8x256xf32> -> vector<8x256xf32>
    %c0_9 = arith.constant 0 : index
    %c0_10 = arith.constant 0 : index
    %12 = vector.load %arg5[%c0_9, %c0_10] : memref<1x256xf32, #tpu.memory_space<vmem>>, vector<1x256xf32>
    %13 = vector.broadcast %12 : vector<1x256xf32> to vector<8x256xf32>
    %14 = arith.addf %11, %13 : vector<8x256xf32>
    %cst_11 = arith.constant 0.000000e+00 : f32
    %15 = vector.broadcast %cst_11 : f32 to vector<8x256xf32>
    %16 = arith.maximumf %14, %15 : vector<8x256xf32>
    %17 = arith.truncf %16 : vector<8x256xf32> to vector<8x256xbf16>
    %c0_12 = arith.constant 0 : index
    %c0_13 = arith.constant 0 : index
    %18 = vector.load %arg6[%c0_12, %c0_13] : memref<256x128xbf16, #tpu.memory_space<vmem>>, vector<256x128xbf16>
    %cst_14 = arith.constant dense<0.000000e+00> : vector<8x128xf32>
    %19 = tpu.matmul %17, %18, %cst_14 {dimension_numbers = #tpu.dot_dimension_numbers<[1], [0], [0], [1], [0, 0, 1, 1], [], []>} : vector<8x256xbf16>, vector<256x128xbf16>, vector<8x128xf32> -> vector<8x128xf32>
    %c0_15 = arith.constant 0 : index
    %c0_16 = arith.constant 0 : index
    %20 = vector.load %arg7[%c0_15, %c0_16] : memref<1x128xf32, #tpu.memory_space<vmem>>, vector<1x128xf32>
    %21 = vector.broadcast %20 : vector<1x128xf32> to vector<8x128xf32>
    %22 = arith.addf %19, %21 : vector<8x128xf32>
    %cst_17 = arith.constant 0.000000e+00 : f32
    %23 = vector.broadcast %cst_17 : f32 to vector<8x128xf32>
    %24 = arith.maximumf %22, %23 : vector<8x128xf32>
    %25 = arith.truncf %24 : vector<8x128xf32> to vector<8x128xbf16>
    %c0_18 = arith.constant 0 : index
    %c0_19 = arith.constant 0 : index
    %26 = vector.load %arg8[%c0_18, %c0_19] : memref<128x128xbf16, #tpu.memory_space<vmem>>, vector<128x128xbf16>
    %cst_20 = arith.constant dense<0.000000e+00> : vector<8x128xf32>
    %27 = tpu.matmul %25, %26, %cst_20 {dimension_numbers = #tpu.dot_dimension_numbers<[1], [0], [0], [1], [0, 0, 1, 1], [], []>} : vector<8x128xbf16>, vector<128x128xbf16>, vector<8x128xf32> -> vector<8x128xf32>
    %c0_21 = arith.constant 0 : index
    %c0_22 = arith.constant 0 : index
    %28 = vector.load %arg9[%c0_21, %c0_22] : memref<1x128xf32, #tpu.memory_space<vmem>>, vector<1x128xf32>
    %29 = vector.broadcast %28 : vector<1x128xf32> to vector<8x128xf32>
    %30 = arith.addf %27, %29 : vector<8x128xf32>
    %cst_23 = arith.constant 0.000000e+00 : f32
    %31 = vector.broadcast %cst_23 : f32 to vector<8x128xf32>
    %32 = arith.maximumf %30, %31 : vector<8x128xf32>
    %33 = arith.truncf %32 : vector<8x128xf32> to vector<8x128xbf16>
    %c0_24 = arith.constant 0 : index
    %c0_25 = arith.constant 0 : index
    %34 = vector.load %arg10[%c0_24, %c0_25] : memref<128x128xbf16, #tpu.memory_space<vmem>>, vector<128x128xbf16>
    %cst_26 = arith.constant dense<0.000000e+00> : vector<8x128xf32>
    %35 = tpu.matmul %33, %34, %cst_26 {dimension_numbers = #tpu.dot_dimension_numbers<[1], [0], [0], [1], [0, 0, 1, 1], [], []>} : vector<8x128xbf16>, vector<128x128xbf16>, vector<8x128xf32> -> vector<8x128xf32>
    %c0_27 = arith.constant 0 : index
    %c0_28 = arith.constant 0 : index
    %36 = vector.load %arg11[%c0_27, %c0_28] : memref<1x128xf32, #tpu.memory_space<vmem>>, vector<1x128xf32>
    %37 = vector.broadcast %36 : vector<1x128xf32> to vector<8x128xf32>
    %38 = arith.addf %35, %37 : vector<8x128xf32>
    %39 = math.tanh %38 : vector<8x128xf32>
    %40 = arith.truncf %39 : vector<8x128xf32> to vector<8x128xbf16>
    %c0_29 = arith.constant 0 : index
    %c0_30 = arith.constant 0 : index
    %41 = vector.load %arg12[%c0_29, %c0_30] : memref<8x128xbf16, #tpu.memory_space<vmem>>, vector<8x128xbf16>
    tpu.vector_store %arg12[%c0_29, %c0_30], %40 {strides = array<i32>} : memref<8x128xbf16, #tpu.memory_space<vmem>>, vector<8x128xbf16>,
    return
  }
  func.func @transform_0(%arg0: i32) -> (i32, i32) {
    %c0_i32 = arith.constant 0 : i32
    %c0_i32_0 = arith.constant 0 : i32
    return %arg0, %c0_i32 : i32, i32
  }
  func.func @transform_1(%arg0: i32) -> (i32, i32) {
    %c0_i32 = arith.constant 0 : i32
    %c0_i32_0 = arith.constant 0 : i32
    %c0_i32_1 = arith.constant 0 : i32
    return %c0_i32, %c0_i32_0 : i32, i32
  }
  func.func @transform_2(%arg0: i32) -> (i32, i32) {
    %c0_i32 = arith.constant 0 : i32
    %c0_i32_0 = arith.constant 0 : i32
    %c0_i32_1 = arith.constant 0 : i32
    return %c0_i32, %c0_i32_0 : i32, i32
  }
  func.func @transform_3(%arg0: i32) -> (i32, i32) {
    %c0_i32 = arith.constant 0 : i32
    %c0_i32_0 = arith.constant 0 : i32
    %c0_i32_1 = arith.constant 0 : i32
    return %c0_i32, %c0_i32_0 : i32, i32
  }
  func.func @transform_4(%arg0: i32) -> (i32, i32) {
    %c0_i32 = arith.constant 0 : i32
    %c0_i32_0 = arith.constant 0 : i32
    %c0_i32_1 = arith.constant 0 : i32
    return %c0_i32, %c0_i32_0 : i32, i32
  }
  func.func @transform_5(%arg0: i32) -> (i32, i32) {
    %c0_i32 = arith.constant 0 : i32
    %c0_i32_0 = arith.constant 0 : i32
    %c0_i32_1 = arith.constant 0 : i32
    return %c0_i32, %c0_i32_0 : i32, i32
  }
  func.func @transform_6(%arg0: i32) -> (i32, i32) {
    %c0_i32 = arith.constant 0 : i32
    %c0_i32_0 = arith.constant 0 : i32
    %c0_i32_1 = arith.constant 0 : i32
    return %c0_i32, %c0_i32_0 : i32, i32
  }
  func.func @transform_7(%arg0: i32) -> (i32, i32) {
    %c0_i32 = arith.constant 0 : i32
    %c0_i32_0 = arith.constant 0 : i32
    %c0_i32_1 = arith.constant 0 : i32
    return %c0_i32, %c0_i32_0 : i32, i32
  }
  func.func @transform_8(%arg0: i32) -> (i32, i32) {
    %c0_i32 = arith.constant 0 : i32
    %c0_i32_0 = arith.constant 0 : i32
    %c0_i32_1 = arith.constant 0 : i32
    return %c0_i32, %c0_i32_0 : i32, i32
  }
  func.func @transform_9(%arg0: i32) -> (i32, i32) {
    %c0_i32 = arith.constant 0 : i32
    %c0_i32_0 = arith.constant 0 : i32
    %c0_i32_1 = arith.constant 0 : i32
    return %c0_i32, %c0_i32_0 : i32, i32
  }
  func.func @transform_10(%arg0: i32) -> (i32, i32) {
    %c0_i32 = arith.constant 0 : i32
    %c0_i32_0 = arith.constant 0 : i32
    %c0_i32_1 = arith.constant 0 : i32
    return %c0_i32, %c0_i32_0 : i32, i32
  }
  func.func @transform_11(%arg0: i32) -> (i32, i32) {
    %c0_i32 = arith.constant 0 : i32
    %c0_i32_0 = arith.constant 0 : i32
    return %arg0, %c0_i32 : i32, i32
  }
}

</mosaic_0001>

<bundles_post_ra>
// kernel: encoder_forward.1
= control target key start
LH: loop header
LB: loop body
LE: loop exit
PB: predicated region body
PF: predicated region fallthrough
CT: control target
= control target key end

     0   :  { %16 = vsyncpa [#allocation3], 0  ;;  %s4289_s0 = inlined_call_operand.vmem [shape: f32[8,784], index: 0, kind: input, shape index: {}]   ;;  %s4290_s1 = inlined_call_operand.hbm [shape: bf16[784,512], index: 1, kind: input, shape index: {}]   ;;  %s4291_s2 = inlined_call_operand.vmem [shape: f32[1,512], index: 2, kind: input, shape index: {}]   ;;  %s4292_s3 = inlined_call_operand.hbm [shape: bf16[512,256], index: 3, kind: input, shape index: {}]   ;;  %s4293_s4 = inlined_call_operand.vmem [shape: f32[1,256], index: 4, kind: input, shape index: {}]   ;;  %s4294_s5 = inlined_call_operand.vmem [shape: bf16[256,128], index: 5, kind: input, shape index: {}]   ;;  %s4295_s6 = inlined_call_operand.vmem [shape: f32[1,128], index: 6, kind: input, shape index: {}]   ;;  %s4296_s7 = inlined_call_operand.vmem [shape: bf16[128,128], index: 7, kind: input, shape index: {}]   ;;  %s4297_s8 = inlined_call_operand.vmem [shape: f32[1,128], index: 8, kind: input, shape index: {}]   ;;  %s4298_s9 = inlined_call_operand.vmem [shape: bf16[128,128], index: 9, kind: input, shape index: {}]   ;;  %s4299_s10 = inlined_call_operand.vmem [shape: f32[1,128], index: 10, kind: input, shape index: {}]   ;;  %s4300_s11 = inlined_call_operand.vmem [shape: bf16[8,128], index: 11, kind: output, shape index: {}]  }
   0x1   :  { %s24_s19 = sshll.u32 %s4290_s1, 4  ;;  %s25_s19 = int_to_ptr.hbm [resolvable:$true] %s24_s19 }
   0x2   :  { %17 = vsyncpa [#allocation5], 0  ;;  %s4005_s20 = smov [#allocation2]   ;;  %s39_s24 = sshll.u32 %s4292_s3, 4  ;;  %s40_s24 = int_to_ptr.hbm [resolvable:$true] %s39_s24 }
   0x3   :  { %s26_s21 = sshll.u32 %s4005_s20, 4  ;;  %s4006_s25 = smov 256   ;;  %s27_s21 = int_to_ptr.vmem [resolvable:$true] %s26_s21 }
   0x4   :  { %s4007_s26 = smov 16   ;;  %s4008_s27 = smov [#allocation4]  }
   0x5   :  { %32 = dma.hbm_to_vmem [thread:$0]  %s25_s19, 25088, %s27_s21, [#allocation3], %s4006_s25, %s4006_s25, %s4007_s26  }
   0x6   :  { %s41_s28 = sshll.u32 %s4008_s27, 4  ;;  %s4009_s29 = smov 128   ;;  %s42_s28 = int_to_ptr.vmem [resolvable:$true] %s41_s28 }
   0x7   :  { %s4010_s30 = smov 8  }
   0x8   :  { %47 = dma.hbm_to_vmem [thread:$0]  %s40_s24, 8192, %s42_s28, [#allocation5], %s4009_s29, %s4009_s29, %s4010_s30  }
   0x9   :  { %4001 = dma.done.wait [#allocation3], 25088  }
   0xa   :  { %4002 = vsyncadd [#allocation3], 4294942208 }
   0xb   :  { %4003 = dma.done.wait [#allocation5], 8192  }
   0xc   :  { %4004 = vsyncadd [#allocation5], 4294959104  ;;  %v2592_v0 = vld [vmem:[#allocation2 + $0xe0] sm:$0xf]  ;;  %v3680_v1 = vld [vmem:[#allocation2 + $0xec] sm:$0xf0] }
   0xd   :  { %v2720_v2 = vld [vmem:[#allocation2 + $0x1e0] sm:$0xf]  ;;  %v2593_v3 = vor.u32 %v3680_v1, %v2592_v0  ;;  %v3712_v4 = vld [vmem:[#allocation2 + $0x1ec] sm:$0xf0]  ;;  %vm1271_vm0 = vcmask 130048  }
   0xe   :  { %v2848_v5 = vld [vmem:[#allocation2 + $0x2e0] sm:$0xf]  ;;  %v3744_v6 = vld [vmem:[#allocation2 + $0x2ec] sm:$0xf0]  ;;  %v2721_v7 = vor.u32 %v3712_v4, %v2720_v2 }
   0xf   :  { %v2849_v8 = vor.u32 %v3744_v6, %v2848_v5  ;;  %v2976_v9 = vld [vmem:[#allocation2 + $0x3e0] sm:$0xf]  ;;  %v3776_v10 = vld [vmem:[#allocation2 + $0x3ec] sm:$0xf0]  ;;  %1275 = vmatpush.bf16.msra.mxu0 %v2593_v3 }
  0x10   :  { %v2576_v11 = vld [vmem:[#allocation2 + $0xc0] sm:$0xf]  ;;  %v2977_v12 = vor.u32 %v3776_v10, %v2976_v9  ;;  %v3676_v13 = vld [vmem:[#allocation2 + $0xcc] sm:$0xf0]  ;;  %1288 = vmatpush.bf16.msra.mxu1 %v2721_v7 }
  0x11   :  { %v2704_v14 = vld [vmem:[#allocation2 + $0x1c0] sm:$0xf]  ;;  %v3708_v15 = vld [vmem:[#allocation2 + $0x1cc] sm:$0xf0]  ;;  %1301 = vmatpush.bf16.msra.mxu2 %v2849_v8  ;;  %v2577_v16 = vor.u32 %v3676_v13, %v2576_v11 }
  0x12   :  { %v2705_v17 = vor.u32 %v3708_v15, %v2704_v14  ;;  %v2832_v18 = vld [vmem:[#allocation2 + $0x2c0] sm:$0xf]  ;;  %v3740_v19 = vld [vmem:[#allocation2 + $0x2cc] sm:$0xf0]  ;;  %1314 = vmatpush.bf16.msra.mxu3 %v2977_v12 }
  0x13   :  { %v2960_v20 = vld [vmem:[#allocation2 + $0x3c0] sm:$0xf]  ;;  %v2833_v21 = vor.u32 %v3740_v19, %v2832_v18  ;;  %v3772_v22 = vld [vmem:[#allocation2 + $0x3cc] sm:$0xf0]  ;;  %1276 = vmatpush.bf16.msra.mxu0 %v2577_v16 }
  0x14   :  { %v2560_v23 = vld [vmem:[#allocation2 + $0xa0] sm:$0xf]  ;;  %v3672_v24 = vld [vmem:[#allocation2 + $0xac] sm:$0xf0]  ;;  %v2961_v25 = vor.u32 %v3772_v22, %v2960_v20  ;;  %1289 = vmatpush.bf16.msra.mxu1 %v2705_v17 }
  0x15   :  { %v2688_v26 = vld [vmem:[#allocation2 + $0x1a0] sm:$0xf]  ;;  %v3704_v27 = vld [vmem:[#allocation2 + $0x1ac] sm:$0xf0]  ;;  %v2561_v29 = vor.u32 %v3672_v24, %v2560_v23  ;;  %1302 = vmatpush.bf16.msra.mxu2 %v2833_v21 }
  0x16   :  { %v2816_v28 = vld [vmem:[#allocation2 + $0x2a0] sm:$0xf]  ;;  %v3736_v30 = vld [vmem:[#allocation2 + $0x2ac] sm:$0xf0]  ;;  %v2689_v33 = vor.u32 %v3704_v27, %v2688_v26  ;;  %1315 = vmatpush.bf16.msra.mxu3 %v2961_v25 }
  0x17   :  { %v2944_v31 = vld [vmem:[#allocation2 + $0x3a0] sm:$0xf]  ;;  %v3768_v32 = vld [vmem:[#allocation2 + $0x3ac] sm:$0xf0]  ;;  %v2817_v34 = vor.u32 %v3736_v30, %v2816_v28  ;;  %1277 = vmatpush.bf16.msra.mxu0 %v2561_v29 }
  0x18   :  { %v2544_v35 = vld [vmem:[#allocation2 + $0x80] sm:$0xf]  ;;  %v3668_v36 = vld [vmem:[#allocation2 + $0x8c] sm:$0xf0]  ;;  %v2945_v38 = vor.u32 %v3768_v32, %v2944_v31  ;;  %1290 = vmatpush.bf16.msra.mxu1 %v2689_v33  ;;  %v3678_v33 = vld [vmem:[#allocation2 + $0xe4] sm:$0xf] }
  0x19   :  { %v2672_v37 = vld [vmem:[#allocation2 + $0x180] sm:$0xf]  ;;  %v3700_v39 = vld [vmem:[#allocation2 + $0x18c] sm:$0xf0]  ;;  %v2545_v44 = vor.u32 %v3668_v36, %v2544_v35  ;;  %1303 = vmatpush.bf16.msra.mxu2 %v2817_v34  ;;  %v2594_v34 = vld [vmem:[#allocation2 + $0xf0] sm:$0xf0] }
  0x1a   :  { %v2800_v40 = vld [vmem:[#allocation2 + $0x280] sm:$0xf]  ;;  %v3732_v41 = vld [vmem:[#allocation2 + $0x28c] sm:$0xf0]  ;;  %v2673_v45 = vor.u32 %v3700_v39, %v2672_v37  ;;  %1316 = vmatpush.bf16.msra.mxu3 %v2945_v38 }
  0x1b   :  { %v2928_v42 = vld [vmem:[#allocation2 + $0x380] sm:$0xf]  ;;  %v3764_v43 = vld [vmem:[#allocation2 + $0x38c] sm:$0xf0]  ;;  %v2801_v46 = vor.u32 %v3732_v41, %v2800_v40  ;;  %1278 = vmatpush.bf16.msra.mxu0 %v2545_v44  ;;  %v2722_v44 = vld [vmem:[#allocation2 + $0x1f0] sm:$0xf0] }
  0x1c   :  { %v2528_v47 = vld [vmem:[#allocation2 + $0x60] sm:$0xf]  ;;  %v3664_v48 = vld [vmem:[#allocation2 + $0x6c] sm:$0xf0]  ;;  %v2929_v50 = vor.u32 %v3764_v43, %v2928_v42  ;;  %1291 = vmatpush.bf16.msra.mxu1 %v2673_v45  ;;  %v3710_v43 = vld [vmem:[#allocation2 + $0x1e4] sm:$0xf] }
  0x1d   :  { %v2656_v49 = vld [vmem:[#allocation2 + $0x160] sm:$0xf]  ;;  %v3696_v51 = vld [vmem:[#allocation2 + $0x16c] sm:$0xf0]  ;;  %v2529_v56 = vor.u32 %v3664_v48, %v2528_v47  ;;  %1304 = vmatpush.bf16.msra.mxu2 %v2801_v46  ;;  %v74_v45 = vld [vmem:[%s4289_s0 + $0x18] sm:$0xff]  ;;  %v2597_v47 = vor.u32 %v3678_v33, %v2594_v34 }
  0x1e   :  { %v2784_v52 = vld [vmem:[#allocation2 + $0x260] sm:$0xf]  ;;  %v3728_v53 = vld [vmem:[#allocation2 + $0x26c] sm:$0xf0]  ;;  %v2657_v57 = vor.u32 %v3696_v51, %v2656_v49  ;;  %1317 = vmatpush.bf16.msra.mxu3 %v2929_v50 }
  0x1f   :  { %v2912_v54 = vld [vmem:[#allocation2 + $0x360] sm:$0xf]  ;;  %v3760_v55 = vld [vmem:[#allocation2 + $0x36c] sm:$0xf0]  ;;  %v2785_v58 = vor.u32 %v3728_v53, %v2784_v52  ;;  %1279 = vmatpush.bf16.msra.mxu0 %v2529_v56  ;;  %v3674_v53 = vld [vmem:[#allocation2 + $0xc4] sm:$0xf] }
  0x20   :  { %v2512_v59 = vld [vmem:[#allocation2 + $0x40] sm:$0xf]  ;;  %v3660_v60 = vld [vmem:[#allocation2 + $0x4c] sm:$0xf0]  ;;  %v2913_v62 = vor.u32 %v3760_v55, %v2912_v54  ;;  %1292 = vmatpush.bf16.msra.mxu1 %v2657_v57  ;;  %v2578_v54 = vld [vmem:[#allocation2 + $0xd0] sm:$0xf0]  ;;  %v4090_v57 = vpack.c.bf16 %v74_v45, %v74_v45 }
  0x21   :  { %v2640_v61 = vld [vmem:[#allocation2 + $0x140] sm:$0xf]  ;;  %v3692_v63 = vld [vmem:[#allocation2 + $0x14c] sm:$0xf0]  ;;  %v2513_v4 = vor.u32 %v3660_v60, %v2512_v59  ;;  %1305 = vmatpush.bf16.msra.mxu2 %v2785_v58  ;;  %v72_v58 = vld [vmem:[%s4289_s0 + $0x8] sm:$0xff]  ;;  %v2725_v59 = vor.u32 %v3710_v43, %v2722_v44 }
  0x22   :  { %v2768_v0 = vld [vmem:[#allocation2 + $0x240] sm:$0xf]  ;;  %v3724_v1 = vld [vmem:[#allocation2 + $0x24c] sm:$0xf0]  ;;  %v2641_v5 = vor.u32 %v3692_v63, %v2640_v61  ;;  %1318 = vmatpush.bf16.msra.mxu3 %v2913_v62  ;;  %v3706_v61 = vld [vmem:[#allocation2 + $0x1c4] sm:$0xf] }
  0x23   :  { %v2896_v2 = vld [vmem:[#allocation2 + $0x340] sm:$0xf]  ;;  %v3756_v3 = vld [vmem:[#allocation2 + $0x34c] sm:$0xf0]  ;;  %v2769_v6 = vor.u32 %v3724_v1, %v2768_v0  ;;  %1280 = vmatpush.bf16.msra.mxu0 %v2513_v4  ;;  %v2706_v62 = vld [vmem:[#allocation2 + $0x1d0] sm:$0xf0]  ;;  %v2581_v0 = vor.u32 %v3674_v53, %v2578_v54 }
  0x24   :  { %v2496_v7 = vld [vmem:[#allocation2 + $0x20] sm:$0xf]  ;;  %v3656_v8 = vld [vmem:[#allocation2 + $0x2c] sm:$0xf0]  ;;  %v2897_v10 = vor.u32 %v3756_v3, %v2896_v2  ;;  %1293 = vmatpush.bf16.msra.mxu1 %v2641_v5  ;;  %v3670_v5 = vld [vmem:[#allocation2 + $0xa4] sm:$0xf] }
  0x25   :  { %v2624_v9 = vld [vmem:[#allocation2 + $0x120] sm:$0xf]  ;;  %v3688_v11 = vld [vmem:[#allocation2 + $0x12c] sm:$0xf0]  ;;  %v2497_v16 = vor.u32 %v3656_v8, %v2496_v7  ;;  %1306 = vmatpush.bf16.msra.mxu2 %v2769_v6  ;;  %v2562_v6 = vld [vmem:[#allocation2 + $0xb0] sm:$0xf0]  ;;  %v4097_v7 = vpack.c.bf16 %v72_v58, %v72_v58  ;;  %v2709_v8 = vor.u32 %v3706_v61, %v2706_v62 }
  0x26   :  { %v2752_v12 = vld [vmem:[#allocation2 + $0x220] sm:$0xf]  ;;  %v3720_v13 = vld [vmem:[#allocation2 + $0x22c] sm:$0xf0]  ;;  %v2625_v20 = vor.u32 %v3688_v11, %v2624_v9  ;;  %1319 = vmatpush.bf16.msra.mxu3 %v2897_v10  ;;  %v3702_v10 = vld [vmem:[#allocation2 + $0x1a4] sm:$0xf] }
  0x27   :  { %v2880_v14 = vld [vmem:[#allocation2 + $0x320] sm:$0xf]  ;;  %v3752_v15 = vld [vmem:[#allocation2 + $0x32c] sm:$0xf0]  ;;  %v2753_v21 = vor.u32 %v3720_v13, %v2752_v12  ;;  %1281 = vmatpush.bf16.msra.mxu0 %v2497_v16  ;;  %v2690_v11 = vld [vmem:[#allocation2 + $0x1b0] sm:$0xf0]  ;;  %v2565_v13 = vor.u32 %v3670_v5, %v2562_v6 }
  0x28   :  { %v2480_v17 = vld [vmem:[#allocation2] sm:$0xf]  ;;  %v3652_v18 = vld [vmem:[#allocation2 + $0xc] sm:$0xf0]  ;;  %v2881_v25 = vor.u32 %v3752_v15, %v2880_v14  ;;  %1294 = vmatpush.bf16.msra.mxu1 %v2625_v20  ;;  %v2693_v20 = vor.u32 %v3702_v10, %v2690_v11  ;;  %v3658_v43 = vld [vmem:[#allocation2 + $0x44] sm:$0xf] }
  0x29   :  { %v2608_v19 = vld [vmem:[#allocation2 + $0x100] sm:$0xf]  ;;  %v3684_v22 = vld [vmem:[#allocation2 + $0x10c] sm:$0xf0]  ;;  %v2481_v32 = vor.u32 %v3652_v18, %v2480_v17  ;;  %1307 = vmatpush.bf16.msra.mxu2 %v2753_v21  ;;  %v3666_v18 = vld [vmem:[#allocation2 + $0x84] sm:$0xf] }
  0x2a   :  { %v2736_v23 = vld [vmem:[#allocation2 + $0x200] sm:$0xf]  ;;  %v3716_v24 = vld [vmem:[#allocation2 + $0x20c] sm:$0xf0]  ;;  %v2609_v36 = vor.u32 %v3684_v22, %v2608_v19  ;;  %1320 = vmatpush.bf16.msra.mxu3 %v2881_v25  ;;  %v2546_v19 = vld [vmem:[#allocation2 + $0x90] sm:$0xf0] }
  0x2b   :  { %v2864_v26 = vld [vmem:[#allocation2 + $0x300] sm:$0xf]  ;;  %v3748_v27 = vld [vmem:[#allocation2 + $0x30c] sm:$0xf0]  ;;  %v2737_v37 = vor.u32 %v3716_v24, %v2736_v23  ;;  %1282 = vmatpush.bf16.msra.mxu0 %v2481_v32  ;;  %v3698_v22 = vld [vmem:[#allocation2 + $0x184] sm:$0xf]  ;;  %v2549_v25 = vor.u32 %v3666_v18, %v2546_v19 }
  0x2c   :  { %v3104_v28 = vld [vmem:[#allocation2 + $0x4e0] sm:$0xf]  ;;  %v3808_v29 = vld [vmem:[#allocation2 + $0x4ec] sm:$0xf0]  ;;  %v2865_v41 = vor.u32 %v3748_v27, %v2864_v26  ;;  %1295 = vmatpush.bf16.msra.mxu1 %v2609_v36  ;;  %v2674_v23 = vld [vmem:[#allocation2 + $0x190] sm:$0xf0] }
  0x2d   :  { %v3232_v30 = vld [vmem:[#allocation2 + $0x5e0] sm:$0xf]  ;;  %v3840_v31 = vld [vmem:[#allocation2 + $0x5ec] sm:$0xf0]  ;;  %v3105_v42 = vor.u32 %v3808_v29, %v3104_v28  ;;  %1308 = vmatpush.bf16.msra.mxu2 %v2737_v37  ;;  %v2677_v33 = vor.u32 %v3698_v22, %v2674_v23  ;;  %v2658_v36 = vld [vmem:[#allocation2 + $0x170] sm:$0xf0] }
  0x2e   :  { %v73_v35 = vld [vmem:[%s4289_s0 + $0x10] sm:$0xff]  ;;  %v3248_v38 = vld [vmem:[#allocation2 + $0x600] sm:$0xf]  ;;  %v3233_v46 = vor.u32 %v3840_v31, %v3232_v30  ;;  %1321 = vmatpush.bf16.msra.mxu3 %v2865_v41  ;;  %v3662_v30 = vld [vmem:[#allocation2 + $0x64] sm:$0xf] }
  0x2f   :  { %v3844_v39 = vld [vmem:[#allocation2 + $0x60c] sm:$0xf0]  ;;  %v71_v40 = vld [vmem:[%s4289_s0] sm:$0xff]  ;;  %v4086_v51 = vpack.c.bf16 %v73_v35, %v73_v35  ;;  %1327 = vmatpush.bf16.msrb.mxu0 %v3105_v42  ;;  %1296 = vmatmul.bf16.vlgmr.msra.gmra.mxu1 %v4097_v7  ;;  %v2530_v31 = vld [vmem:[#allocation2 + $0x70] sm:$0xf0] }
  0x30   :  { %v3088_v48 = vld [vmem:[#allocation2 + $0x4c0] sm:$0xf]  ;;  %v3804_v49 = vld [vmem:[#allocation2 + $0x4cc] sm:$0xf0]  ;;  %v4088_v55 = vpack.c.bf16 %v71_v40, %v71_v40  ;;  %v3249_v56 = vor.u32 %v3844_v39, %v3248_v38  ;;  %1340 = vmatpush.bf16.msrb.mxu1 %v3233_v46  ;;  %v3694_v35 = vld [vmem:[#allocation2 + $0x164] sm:$0xf]  ;;  %v2533_v38 = vor.u32 %v3662_v30, %v2530_v31 }
  0x31   :  { %v3216_v50 = vld [vmem:[#allocation2 + $0x5c0] sm:$0xf]  ;;  %v3836_v52 = vld [vmem:[#allocation2 + $0x5cc] sm:$0xf0]  ;;  %v3089_v60 = vor.u32 %v3804_v49, %v3088_v48  ;;  %1309 = vmatmul.bf16.vlgmr.msra.gmra.mxu2 %v4086_v51  ;;  %1322 = vmatmul.bf16.vlgmr.msra.gmra.mxu3 %v4090_v57  ;;  %v2514_v44 = vld [vmem:[#allocation2 + $0x50] sm:$0xf0]  ;;  %v2661_v46 = vor.u32 %v3694_v35, %v2658_v36 }
  0x32   :  { %1366 = vmatpush.bf16.msrb.mxu3 %v2597_v47  ;;  %v3217_v63 = vor.u32 %v3836_v52, %v3216_v50  ;;  %v3072_v1 = vld [vmem:[#allocation2 + $0x4a0] sm:$0xf]  ;;  %v3800_v2 = vld [vmem:[#allocation2 + $0x4ac] sm:$0xf0]  ;;  %1283 = vmatmul.bf16.vlgmr.msra.gmra.mxu0 %v4088_v55  ;;  %v3690_v48 = vld [vmem:[#allocation2 + $0x144] sm:$0xf]  ;;  %v2517_v52 = vor.u32 %v3658_v43, %v2514_v44 }
  0x33   :  { %v3200_v3 = vld [vmem:[#allocation2 + $0x5a0] sm:$0xf]  ;;  %v3832_v4 = vld [vmem:[#allocation2 + $0x5ac] sm:$0xf0]  ;;  %1360 = vmatpush.bf16.msrb.mxu2 %v3249_v56  ;;  %1328 = vmatpush.bf16.msrb.mxu0 %v3089_v60  ;;  %v3073_v9 = vor.u32 %v3800_v2, %v3072_v1  ;;  %v2642_v49 = vld [vmem:[#allocation2 + $0x150] sm:$0xf0] }
  0x34   :  { %1341 = vmatpush.bf16.msrb.mxu1 %v3217_v63  ;;  %v3201_v12 = vor.u32 %v3832_v4, %v3200_v3  ;;  %v3056_v14 = vld [vmem:[#allocation2 + $0x480] sm:$0xf]  ;;  %v3796_v15 = vld [vmem:[#allocation2 + $0x48c] sm:$0xf0]  ;;  %v2498_v60 = vld [vmem:[#allocation2 + $0x30] sm:$0xf0]  ;;  %v2645_v61 = vor.u32 %v3690_v48, %v2642_v49 }
  0x35   :  { %v3184_v16 = vld [vmem:[#allocation2 + $0x580] sm:$0xf]  ;;  %v3828_v17 = vld [vmem:[#allocation2 + $0x58c] sm:$0xf0]  ;;  %v3057_v21 = vor.u32 %v3796_v15, %v3056_v14  ;;  %v3686_v63 = vld [vmem:[#allocation2 + $0x124] sm:$0xf] }
  0x36   :  { %1367 = vmatpush.bf16.msrb.mxu3 %v2581_v0  ;;  %v3185_v24 = vor.u32 %v3828_v17, %v3184_v16  ;;  %v3040_v26 = vld [vmem:[#allocation2 + $0x460] sm:$0xf]  ;;  %v3792_v27 = vld [vmem:[#allocation2 + $0x46c] sm:$0xf0]  ;;  %v2626_v0 = vld [vmem:[#allocation2 + $0x130] sm:$0xf0] }
  0x37   :  { %1379 = vmatpush.bf16.msra.mxu2 %v2725_v59  ;;  %1329 = vmatpush.bf16.msrb.mxu0 %v3073_v9  ;;  %v3168_v28 = vld [vmem:[#allocation2 + $0x560] sm:$0xf]  ;;  %v3824_v29 = vld [vmem:[#allocation2 + $0x56c] sm:$0xf0]  ;;  %v3041_v34 = vor.u32 %v3792_v27, %v3040_v26  ;;  %v3654_v59 = vld [vmem:[#allocation2 + $0x24] sm:$0xf]  ;;  %v2629_v14 = vor.u32 %v3686_v63, %v2626_v0 }
  0x38   :  { %1342 = vmatpush.bf16.msrb.mxu1 %v3201_v12  ;;  %v77_v32 = vld [vmem:[%s4289_s0 + $0x30] sm:$0xff]  ;;  %v3169_v37 = vor.u32 %v3824_v29, %v3168_v28  ;;  %v3024_v39 = vld [vmem:[#allocation2 + $0x440] sm:$0xf]  ;;  %v2501_v3 = vor.u32 %v3654_v59, %v2498_v60  ;;  %v3742_v10 = vld [vmem:[#allocation2 + $0x2e4] sm:$0xf] }
  0x39   :  { %v3788_v40 = vld [vmem:[#allocation2 + $0x44c] sm:$0xf0]  ;;  %v3152_v41 = vld [vmem:[#allocation2 + $0x540] sm:$0xf]  ;;  %v4104_v45 = vpack.c.bf16 %v77_v32, %v77_v32  ;;  %v2482_v9 = vld [vmem:[#allocation2 + $0x10] sm:$0xf0] }
  0x3a   :  { %1368 = vmatpush.bf16.msrb.mxu3 %v2565_v13  ;;  %v3820_v42 = vld [vmem:[#allocation2 + $0x54c] sm:$0xf0]  ;;  %v3025_v47 = vor.u32 %v3788_v40, %v3024_v39  ;;  %v3008_v53 = vld [vmem:[#allocation2 + $0x420] sm:$0xf]  ;;  %v2850_v11 = vld [vmem:[#allocation2 + $0x2f0] sm:$0xf0] }
  0x3b   :  { %1380 = vmatpush.bf16.msra.mxu2 %v2709_v8  ;;  %1330 = vmatpush.bf16.msrb.mxu0 %v3057_v21  ;;  %v3153_v50 = vor.u32 %v3820_v42, %v3152_v41  ;;  %v3784_v54 = vld [vmem:[#allocation2 + $0x42c] sm:$0xf0]  ;;  %v3136_v56 = vld [vmem:[#allocation2 + $0x520] sm:$0xf]  ;;  %v3650_v8 = vld [vmem:[#allocation2 + $0x4] sm:$0xf] }
  0x3c   :  { %1343 = vmatpush.bf16.msrb.mxu1 %v3185_v24  ;;  %v3816_v58 = vld [vmem:[#allocation2 + $0x52c] sm:$0xf0]  ;;  %v3009_v62 = vor.u32 %v3784_v54, %v3008_v53  ;;  %v2992_v1 = vld [vmem:[#allocation2 + $0x400] sm:$0xf]  ;;  %v3774_v12 = vld [vmem:[#allocation2 + $0x3e4] sm:$0xf]  ;;  %v2853_v24 = vor.u32 %v3742_v10, %v2850_v11 }
  0x3d   :  { %v3137_v2 = vor.u32 %v3816_v58, %v3136_v56  ;;  %v3780_v4 = vld [vmem:[#allocation2 + $0x40c] sm:$0xf0]  ;;  %v3120_v5 = vld [vmem:[#allocation2 + $0x500] sm:$0xf]  ;;  %v2978_v13 = vld [vmem:[#allocation2 + $0x3f0] sm:$0xf0] }
  0x3e   :  { %1369 = vmatpush.bf16.msrb.mxu3 %v2549_v25  ;;  %v3812_v6 = vld [vmem:[#allocation2 + $0x50c] sm:$0xf0]  ;;  %v2993_v15 = vor.u32 %v3780_v4, %v2992_v1  ;;  %v3806_v16 = vld [vmem:[#allocation2 + $0x4e4] sm:$0xf]  ;;  %v3106_v17 = vld [vmem:[#allocation2 + $0x4f0] sm:$0xf0]  ;;  %v2981_v25 = vor.u32 %v3774_v12, %v2978_v13 }
  0x3f   :  { %1381 = vmatpush.bf16.msra.mxu2 %v2693_v20  ;;  %1331 = vmatpush.bf16.msrb.mxu0 %v3041_v34  ;;  %v75_v18 = vld [vmem:[%s4289_s0 + $0x20] sm:$0xff]  ;;  %v3121_v19 = vor.u32 %v3812_v6, %v3120_v5  ;;  %v2485_v20 = vor.u32 %v3650_v8, %v2482_v9  ;;  %v2610_v22 = vld [vmem:[#allocation2 + $0x110] sm:$0xf0]  ;;  %v76_v23 = vld [vmem:[%s4289_s0 + $0x28] sm:$0xff]  ;;  %v3109_v29 = vor.u32 %v3806_v16, %v3106_v17 }
  0x40   :  { %1344 = vmatpush.bf16.msrb.mxu1 %v3169_v37  ;;  %v3682_v21 = vld [vmem:[#allocation2 + $0x104] sm:$0xf]  ;;  %v3234_v27 = vld [vmem:[#allocation2 + $0x5f0] sm:$0xf0]  ;;  %v4114_v30 = vpack.c.bf16 %v75_v18, %v75_v18  ;;  %v4116_v35 = vpack.c.bf16 %v76_v23, %v76_v23 }
  0x41   :  { %3262 = vmatmul.msk.bf16.vlgmr.msrb.gmra.mxu2 %vm1271_vm0, %v4104_v45  ;;  %v3838_v26 = vld [vmem:[#allocation2 + $0x5e4] sm:$0xf]  ;;  %v2834_v31 = vld [vmem:[#allocation2 + $0x2d0] sm:$0xf0]  ;;  %v2613_v34 = vor.u32 %v3682_v21, %v2610_v22 }
  0x42   :  { %1370 = vmatpush.bf16.msrb.mxu3 %v2533_v38  ;;  %v3738_v28 = vld [vmem:[#allocation2 + $0x2c4] sm:$0xf]  ;;  %v3090_v37 = vld [vmem:[#allocation2 + $0x4d0] sm:$0xf0]  ;;  %v3237_v38 = vor.u32 %v3838_v26, %v3234_v27 }
  0x43   :  { %1382 = vmatpush.bf16.msra.mxu2 %v2677_v33  ;;  %1332 = vmatpush.bf16.msrb.mxu0 %v3025_v47  ;;  %v3770_v32 = vld [vmem:[#allocation2 + $0x3c4] sm:$0xf]  ;;  %v2962_v33 = vld [vmem:[#allocation2 + $0x3d0] sm:$0xf0]  ;;  %v2837_v39 = vor.u32 %v3738_v28, %v2834_v31 }
  0x44   :  { %1345 = vmatpush.bf16.msrb.mxu1 %v3153_v50  ;;  %v3802_v36 = vld [vmem:[#allocation2 + $0x4c4] sm:$0xf]  ;;  %v2965_v40 = vor.u32 %v3770_v32, %v2962_v33  ;;  %v3218_v42 = vld [vmem:[#allocation2 + $0x5d0] sm:$0xf0] }
  0x45   :  { %v3834_v41 = vld [vmem:[#allocation2 + $0x5c4] sm:$0xf]  ;;  %v3093_v44 = vor.u32 %v3802_v36, %v3090_v37  ;;  %v2946_v48 = vld [vmem:[#allocation2 + $0x3b0] sm:$0xf0] }
  0x46   :  { %1371 = vmatpush.bf16.msrb.mxu3 %v2517_v52  ;;  %v3734_v43 = vld [vmem:[#allocation2 + $0x2a4] sm:$0xf]  ;;  %v3074_v50 = vld [vmem:[#allocation2 + $0x4b0] sm:$0xf0]  ;;  %v3221_v52 = vor.u32 %v3834_v41, %v3218_v42 }
  0x47   :  { %1383 = vmatpush.bf16.msra.mxu2 %v2661_v46  ;;  %1333 = vmatpush.bf16.msrb.mxu0 %v3009_v62  ;;  %v2818_v46 = vld [vmem:[#allocation2 + $0x2b0] sm:$0xf0]  ;;  %v3766_v47 = vld [vmem:[#allocation2 + $0x3a4] sm:$0xf] }
  0x48   :  { %1346 = vmatpush.bf16.msrb.mxu1 %v3137_v2  ;;  %v3798_v49 = vld [vmem:[#allocation2 + $0x4a4] sm:$0xf]  ;;  %v2821_v53 = vor.u32 %v3734_v43, %v2818_v46  ;;  %v2949_v54 = vor.u32 %v3766_v47, %v2946_v48  ;;  %v3202_v58 = vld [vmem:[#allocation2 + $0x5b0] sm:$0xf0] }
  0x49   :  { %v3830_v56 = vld [vmem:[#allocation2 + $0x5a4] sm:$0xf]  ;;  %v3077_v60 = vor.u32 %v3798_v49, %v3074_v50  ;;  %v2930_v63 = vld [vmem:[#allocation2 + $0x390] sm:$0xf0] }
  0x4a   :  { %1372 = vmatpush.bf16.msrb.mxu3 %v2501_v3  ;;  %v3730_v59 = vld [vmem:[#allocation2 + $0x284] sm:$0xf]  ;;  %v3058_v1 = vld [vmem:[#allocation2 + $0x490] sm:$0xf0]  ;;  %v3205_v2 = vor.u32 %v3830_v56, %v3202_v58  ;;  %v2600_v56 = vld [vmem:[#allocation2 + $0xe8] sm:$0xf] }
  0x4b   :  { %1384 = vmatpush.bf16.msra.mxu2 %v2645_v61  ;;  %1334 = vmatpush.bf16.msrb.mxu0 %v2993_v15  ;;  %v2802_v61 = vld [vmem:[#allocation2 + $0x290] sm:$0xf0]  ;;  %v3762_v62 = vld [vmem:[#allocation2 + $0x384] sm:$0xf]  ;;  %v3681_v58 = vld [vmem:[#allocation2 + $0xf4] sm:$0xf0] }
  0x4c   :  { %1347 = vmatpush.bf16.msrb.mxu1 %v3121_v19  ;;  %v3794_v0 = vld [vmem:[#allocation2 + $0x484] sm:$0xf]  ;;  %v2805_v3 = vor.u32 %v3730_v59, %v2802_v61  ;;  %v2933_v4 = vor.u32 %v3762_v62, %v2930_v63  ;;  %v3186_v6 = vld [vmem:[#allocation2 + $0x590] sm:$0xf0]  ;;  %v2856_v62 = vld [vmem:[#allocation2 + $0x2e8] sm:$0xf] }
  0x4d   :  { %v3826_v5 = vld [vmem:[#allocation2 + $0x584] sm:$0xf]  ;;  %v3061_v9 = vor.u32 %v3794_v0, %v3058_v1  ;;  %v2786_v10 = vld [vmem:[#allocation2 + $0x270] sm:$0xf0]  ;;  %v3745_v63 = vld [vmem:[#allocation2 + $0x2f4] sm:$0xf0] }
  0x4e   :  { %1373 = vmatpush.bf16.msrb.mxu3 %v2485_v20  ;;  %1335 = vmatmul.bf16.vlgmr.msrb.gmra.mxu0 %v4114_v30  ;;  %v3726_v8 = vld [vmem:[#allocation2 + $0x264] sm:$0xf]  ;;  %v2914_v12 = vld [vmem:[#allocation2 + $0x370] sm:$0xf0]  ;;  %v3189_v15 = vor.u32 %v3826_v5, %v3186_v6  ;;  %v2601_v5 = vor.u32 %v3681_v58, %v2600_v56  ;;  %v2984_v6 = vld [vmem:[#allocation2 + $0x3e8] sm:$0xf] }
  0x4f   :  { %1385 = vmatpush.bf16.msra.mxu2 %v2629_v14  ;;  %1392 = vmatpush.bf16.msra.mxu0 %v2853_v24  ;;  %v3758_v11 = vld [vmem:[#allocation2 + $0x364] sm:$0xf]  ;;  %v3042_v14 = vld [vmem:[#allocation2 + $0x470] sm:$0xf0]  ;;  %v2789_v16 = vor.u32 %v3726_v8, %v2786_v10  ;;  %v3777_v8 = vld [vmem:[#allocation2 + $0x3f4] sm:$0xf0] }
  0x50   :  { %1405 = vmatpush.bf16.msra.mxu1 %v2981_v25  ;;  %v3790_v13 = vld [vmem:[#allocation2 + $0x464] sm:$0xf]  ;;  %v2917_v17 = vor.u32 %v3758_v11, %v2914_v12  ;;  %v3170_v19 = vld [vmem:[#allocation2 + $0x570] sm:$0xf0]  ;;  %v2728_v10 = vld [vmem:[#allocation2 + $0x1e8] sm:$0xf]  ;;  %v2857_v12 = vor.u32 %v3745_v63, %v2856_v62 }
  0x51   :  { %1348 = vmatmul.bf16.vlgmr.msrb.gmra.mxu1 %v4116_v35  ;;  %1374 = vmatmul.bf16.vlgmr.msrb.gmra.mxu3 %v4088_v55  ;;  %v3822_v18 = vld [vmem:[#allocation2 + $0x564] sm:$0xf]  ;;  %v3045_v21 = vor.u32 %v3790_v13, %v3042_v14  ;;  %v2770_v22 = vld [vmem:[#allocation2 + $0x250] sm:$0xf0]  ;;  %v3713_v11 = vld [vmem:[#allocation2 + $0x1f4] sm:$0xf0] }
  0x52   :  { %1418 = vmatpush.bf16.msra.mxu3 %v3109_v29  ;;  %v3722_v20 = vld [vmem:[#allocation2 + $0x244] sm:$0xf]  ;;  %v2898_v24 = vld [vmem:[#allocation2 + $0x350] sm:$0xf0]  ;;  %v3173_v27 = vor.u32 %v3822_v18, %v3170_v19  ;;  %v2584_v14 = vld [vmem:[#allocation2 + $0xc8] sm:$0xf]  ;;  %v2729_v19 = vor.u32 %v3713_v11, %v2728_v10 }
  0x53   :  { %1386 = vmatpush.bf16.msra.mxu2 %v2613_v34  ;;  %1393 = vmatpush.bf16.msra.mxu0 %v2837_v39  ;;  %v3754_v23 = vld [vmem:[#allocation2 + $0x344] sm:$0xf]  ;;  %v3026_v26 = vld [vmem:[#allocation2 + $0x450] sm:$0xf0]  ;;  %v2773_v28 = vor.u32 %v3722_v20, %v2770_v22  ;;  %v3741_v18 = vld [vmem:[#allocation2 + $0x2d4] sm:$0xf0] }
  0x54   :  { %1406 = vmatpush.bf16.msra.mxu1 %v2965_v40  ;;  %v3786_v25 = vld [vmem:[#allocation2 + $0x444] sm:$0xf]  ;;  %v2901_v29 = vor.u32 %v3754_v23, %v2898_v24  ;;  %v3154_v32 = vld [vmem:[#allocation2 + $0x550] sm:$0xf0]  ;;  %v2968_v20 = vld [vmem:[#allocation2 + $0x3c8] sm:$0xf] }
  0x55   :  { %v3818_v31 = vld [vmem:[#allocation2 + $0x544] sm:$0xf]  ;;  %v3029_v34 = vor.u32 %v3786_v25, %v3026_v26  ;;  %v2754_v36 = vld [vmem:[#allocation2 + $0x230] sm:$0xf0]  ;;  %v2712_v23 = vld [vmem:[#allocation2 + $0x1c8] sm:$0xf] }
  0x56   :  { %1419 = vmatpush.bf16.msra.mxu3 %v3093_v44  ;;  %1387 = vmatmul.bf16.vlgmr.msra.gmra.mxu2 %v4097_v7  ;;  %v3718_v33 = vld [vmem:[#allocation2 + $0x224] sm:$0xf]  ;;  %v3010_v40 = vld [vmem:[#allocation2 + $0x430] sm:$0xf0]  ;;  %v3157_v42 = vor.u32 %v3818_v31, %v3154_v32  ;;  %v3709_v24 = vld [vmem:[#allocation2 + $0x1d4] sm:$0xf0] }
  0x57   :  { %1431 = vmatpush.bf16.msrb.mxu2 %v3237_v38  ;;  %1394 = vmatpush.bf16.msra.mxu0 %v2821_v53  ;;  %v3750_v37 = vld [vmem:[#allocation2 + $0x324] sm:$0xf]  ;;  %v2882_v38 = vld [vmem:[#allocation2 + $0x330] sm:$0xf0]  ;;  %v2757_v47 = vor.u32 %v3718_v33, %v2754_v36  ;;  %v2568_v26 = vld [vmem:[#allocation2 + $0xa8] sm:$0xf]  ;;  %v2713_v32 = vor.u32 %v3709_v24, %v2712_v23 }
  0x58   :  { %1407 = vmatpush.bf16.msra.mxu1 %v2949_v54  ;;  %v3782_v39 = vld [vmem:[#allocation2 + $0x424] sm:$0xf]  ;;  %v3138_v43 = vld [vmem:[#allocation2 + $0x530] sm:$0xf0]  ;;  %v2885_v48 = vor.u32 %v3750_v37, %v2882_v38  ;;  %v3737_v31 = vld [vmem:[#allocation2 + $0x2b4] sm:$0xf0] }
  0x59   :  { %v3814_v41 = vld [vmem:[#allocation2 + $0x524] sm:$0xf]  ;;  %v2738_v46 = vld [vmem:[#allocation2 + $0x210] sm:$0xf0]  ;;  %v3013_v53 = vor.u32 %v3782_v39, %v3010_v40  ;;  %v2952_v33 = vld [vmem:[#allocation2 + $0x3a8] sm:$0xf] }
  0x5a   :  { %1420 = vmatpush.bf16.msra.mxu3 %v3077_v60  ;;  %v3714_v44 = vld [vmem:[#allocation2 + $0x204] sm:$0xf]  ;;  %v2866_v50 = vld [vmem:[#allocation2 + $0x310] sm:$0xf0]  ;;  %v3141_v60 = vor.u32 %v3814_v41, %v3138_v43  ;;  %v2696_v37 = vld [vmem:[#allocation2 + $0x1a8] sm:$0xf] }
  0x5b   :  { %1432 = vmatpush.bf16.msrb.mxu2 %v3221_v52  ;;  %1395 = vmatpush.bf16.msra.mxu0 %v2805_v3  ;;  %v3746_v49 = vld [vmem:[#allocation2 + $0x304] sm:$0xf]  ;;  %v2994_v54 = vld [vmem:[#allocation2 + $0x410] sm:$0xf0]  ;;  %v2741_v0 = vor.u32 %v3714_v44, %v2738_v46  ;;  %v3705_v38 = vld [vmem:[#allocation2 + $0x1b4] sm:$0xf0] }
  0x5c   :  { %1408 = vmatpush.bf16.msra.mxu1 %v2933_v4  ;;  %v3778_v52 = vld [vmem:[#allocation2 + $0x404] sm:$0xf]  ;;  %v3250_v61 = vld [vmem:[#allocation2 + $0x610] sm:$0xf0]  ;;  %v2869_v1 = vor.u32 %v3746_v49, %v2866_v50  ;;  %v2552_v40 = vld [vmem:[#allocation2 + $0x88] sm:$0xf]  ;;  %v2697_v46 = vor.u32 %v3705_v38, %v2696_v37 }
  0x5d   :  { %v3842_v59 = vld [vmem:[#allocation2 + $0x604] sm:$0xf]  ;;  %v3122_v3 = vld [vmem:[#allocation2 + $0x510] sm:$0xf0]  ;;  %v2997_v4 = vor.u32 %v3778_v52, %v2994_v54  ;;  %v3669_v41 = vld [vmem:[#allocation2 + $0x94] sm:$0xf0] }
  0x5e   :  { %1421 = vmatpush.bf16.msra.mxu3 %v3061_v9  ;;  %v3253_v9 = vor.u32 %v3842_v59, %v3250_v61  ;;  %v2808_v43 = vld [vmem:[#allocation2 + $0x288] sm:$0xf]  ;;  %v3733_v44 = vld [vmem:[#allocation2 + $0x294] sm:$0xf0]  ;;  %v2553_v49 = vor.u32 %v3669_v41, %v2552_v40 }
  0x5f   :  { %1433 = vmatpush.bf16.msrb.mxu2 %v3205_v2  ;;  %1396 = vmatpush.bf16.msra.mxu0 %v2789_v16  ;;  %v3810_v2 = vld [vmem:[#allocation2 + $0x504] sm:$0xf]  ;;  %v2985_v16 = vor.u32 %v3777_v8, %v2984_v6  ;;  %v2680_v50 = vld [vmem:[#allocation2 + $0x188] sm:$0xf]  ;;  %v3701_v52 = vld [vmem:[#allocation2 + $0x194] sm:$0xf0] }
  0x60   :  { %1409 = vmatpush.bf16.msra.mxu1 %v2917_v17  ;;  %v3125_v13 = vor.u32 %v3810_v2, %v3122_v3  ;;  %v2840_v17 = vld [vmem:[#allocation2 + $0x2c8] sm:$0xf]  ;;  %v3665_v56 = vld [vmem:[#allocation2 + $0x74] sm:$0xf0]  ;;  %v2681_v61 = vor.u32 %v3701_v52, %v2680_v50 }
  0x61   :  { %v2841_v25 = vor.u32 %v3741_v18, %v2840_v17  ;;  %v2536_v54 = vld [vmem:[#allocation2 + $0x68] sm:$0xf]  ;;  %v3761_v63 = vld [vmem:[#allocation2 + $0x374] sm:$0xf0] }
  0x62   :  { %1422 = vmatpush.bf16.msra.mxu3 %v3045_v21  ;;  %v3773_v21 = vld [vmem:[#allocation2 + $0x3d4] sm:$0xf0]  ;;  %v2792_v59 = vld [vmem:[#allocation2 + $0x268] sm:$0xf] }
  0x63   :  { %1434 = vmatpush.bf16.msrb.mxu2 %v3189_v15  ;;  %1397 = vmatpush.bf16.msra.mxu0 %v2773_v28  ;;  %v3677_v15 = vld [vmem:[#allocation2 + $0xd4] sm:$0xf0]  ;;  %v2969_v28 = vor.u32 %v3773_v21, %v2968_v20  ;;  %v2920_v62 = vld [vmem:[#allocation2 + $0x368] sm:$0xf] }
  0x64   :  { %1410 = vmatpush.bf16.msra.mxu1 %v2901_v29  ;;  %v2585_v22 = vor.u32 %v3677_v15, %v2584_v14  ;;  %v2824_v29 = vld [vmem:[#allocation2 + $0x2a8] sm:$0xf]  ;;  %v3697_v2 = vld [vmem:[#allocation2 + $0x174] sm:$0xf0]  ;;  %v2921_v6 = vor.u32 %v3761_v63, %v2920_v62 }
  0x65   :  { %v2825_v39 = vor.u32 %v3737_v31, %v2824_v29  ;;  %v2776_v8 = vld [vmem:[#allocation2 + $0x248] sm:$0xf]  ;;  %v3693_v15 = vld [vmem:[#allocation2 + $0x154] sm:$0xf0] }
  0x66   :  { %1423 = vmatpush.bf16.msra.mxu3 %v3029_v34  ;;  %v3769_v34 = vld [vmem:[#allocation2 + $0x3b4] sm:$0xf0]  ;;  %v2904_v11 = vld [vmem:[#allocation2 + $0x348] sm:$0xf] }
  0x67   :  { %1435 = vmatpush.bf16.msrb.mxu2 %v3173_v27  ;;  %1398 = vmatpush.bf16.msra.mxu0 %v2757_v47  ;;  %v3673_v27 = vld [vmem:[#allocation2 + $0xb4] sm:$0xf0]  ;;  %v2936_v47 = vld [vmem:[#allocation2 + $0x388] sm:$0xf] }
  0x68   :  { %1411 = vmatpush.bf16.msra.mxu1 %v2885_v48  ;;  %v2569_v36 = vor.u32 %v3673_v27, %v2568_v26  ;;  %v3765_v48 = vld [vmem:[#allocation2 + $0x394] sm:$0xf0]  ;;  %v2648_v14 = vld [vmem:[#allocation2 + $0x148] sm:$0xf] }
  0x69   :  { %v2937_v58 = vor.u32 %v3765_v48, %v2936_v47  ;;  %v2504_v17 = vld [vmem:[#allocation2 + $0x28] sm:$0xf]  ;;  %v3657_v18 = vld [vmem:[#allocation2 + $0x34] sm:$0xf0]  ;;  %v3679_v47 = vld [vmem:[#allocation2 + $0xec] sm:$0xf] }
  0x6a   :  { %1424 = vmatpush.bf16.msra.mxu3 %v3013_v53  ;;  %v2809_v53 = vor.u32 %v3733_v44, %v2808_v43  ;;  %v2760_v20 = vld [vmem:[#allocation2 + $0x228] sm:$0xf]  ;;  %v3721_v21 = vld [vmem:[#allocation2 + $0x234] sm:$0xf0]  ;;  %v2602_v48 = vld [vmem:[#allocation2 + $0xf8] sm:$0xf0] }
  0x6b   :  { %1436 = vmatpush.bf16.msrb.mxu2 %v3157_v42  ;;  %1399 = vmatpush.bf16.msra.mxu0 %v2741_v0  ;;  %v2953_v42 = vor.u32 %v3769_v34, %v2952_v33  ;;  %v2537_v0 = vor.u32 %v3665_v56, %v2536_v54  ;;  %v2888_v23 = vld [vmem:[#allocation2 + $0x328] sm:$0xf]  ;;  %v3753_v24 = vld [vmem:[#allocation2 + $0x334] sm:$0xf0]  ;;  %v2761_v29 = vor.u32 %v3721_v21, %v2760_v20 }
  0x6c   :  { %1412 = vmatpush.bf16.msra.mxu1 %v2869_v1  ;;  %v2664_v1 = vld [vmem:[#allocation2 + $0x168] sm:$0xf]  ;;  %v3689_v27 = vld [vmem:[#allocation2 + $0x134] sm:$0xf0]  ;;  %v2889_v34 = vor.u32 %v3753_v24, %v2888_v23  ;;  %v2605_v63 = vor.u32 %v3679_v47, %v2602_v48  ;;  %v2698_v23 = vld [vmem:[#allocation2 + $0x1b8] sm:$0xf0] }
  0x6d   :  { %v2665_v10 = vor.u32 %v3697_v2, %v2664_v1  ;;  %v2632_v26 = vld [vmem:[#allocation2 + $0x128] sm:$0xf]  ;;  %v3653_v31 = vld [vmem:[#allocation2 + $0x14] sm:$0xf0]  ;;  %v3675_v1 = vld [vmem:[#allocation2 + $0xcc] sm:$0xf] }
  0x6e   :  { %1425 = vmatpush.bf16.msra.mxu3 %v2997_v4  ;;  %1400 = vmatmul.bf16.vlgmr.msra.gmra.mxu0 %v4086_v51  ;;  %v2520_v4 = vld [vmem:[#allocation2 + $0x48] sm:$0xf]  ;;  %v3809_v33 = vld [vmem:[#allocation2 + $0x4f4] sm:$0xf0]  ;;  %v2633_v40 = vor.u32 %v3689_v27, %v2632_v26  ;;  %v2586_v2 = vld [vmem:[#allocation2 + $0xd8] sm:$0xf0] }
  0x6f   :  { %1437 = vmatpush.bf16.msrb.mxu2 %v3141_v60  ;;  %1483 = vmatpush.bf16.msrb.mxu0 %v2857_v12  ;;  %v3729_v60 = vld [vmem:[#allocation2 + $0x274] sm:$0xf0]  ;;  %v2744_v37 = vld [vmem:[#allocation2 + $0x208] sm:$0xf]  ;;  %v3667_v26 = vld [vmem:[#allocation2 + $0x8c] sm:$0xf] }
  0x70   :  { %1457 = vmatpush.bf16.msrb.mxu1 %v2601_v5  ;;  %v2793_v3 = vor.u32 %v3729_v60, %v2792_v59  ;;  %v3661_v5 = vld [vmem:[#allocation2 + $0x54] sm:$0xf0]  ;;  %v3240_v52 = vld [vmem:[#allocation2 + $0x5e8] sm:$0xf]  ;;  %v3711_v60 = vld [vmem:[#allocation2 + $0x1ec] sm:$0xf] }
  0x71   :  { %1426 = vmatmul.bf16.vlgmr.msra.gmra.mxu3 %v4114_v30  ;;  %1413 = vmatmul.bf16.vlgmr.msra.gmra.mxu1 %v4090_v57  ;;  %v3757_v12 = vld [vmem:[#allocation2 + $0x354] sm:$0xf0]  ;;  %v3096_v54 = vld [vmem:[#allocation2 + $0x4c8] sm:$0xf]  ;;  %v2554_v27 = vld [vmem:[#allocation2 + $0x98] sm:$0xf0] }
  0x72   :  { %1451 = vmatpush.bf16.msrb.mxu3 %v3253_v9  ;;  %v3725_v9 = vld [vmem:[#allocation2 + $0x254] sm:$0xf0]  ;;  %v3064_v20 = vld [vmem:[#allocation2 + $0x488] sm:$0xf] }
  0x73   :  { %1438 = vmatpush.bf16.msrb.mxu2 %v3125_v13  ;;  %1484 = vmatpush.bf16.msrb.mxu0 %v2841_v25  ;;  %v2521_v13 = vor.u32 %v3661_v5, %v2520_v4  ;;  %v2505_v25 = vor.u32 %v3657_v18, %v2504_v17  ;;  %v3717_v38 = vld [vmem:[#allocation2 + $0x214] sm:$0xf0]  ;;  %v3224_v5 = vld [vmem:[#allocation2 + $0x5c8] sm:$0xf] }
  0x74   :  { %1458 = vmatpush.bf16.msrb.mxu1 %v2585_v22  ;;  %v2649_v22 = vor.u32 %v3693_v15, %v2648_v14  ;;  %v3749_v41 = vld [vmem:[#allocation2 + $0x314] sm:$0xf0]  ;;  %v2745_v50 = vor.u32 %v3717_v38, %v2744_v37  ;;  %v3671_v14 = vld [vmem:[#allocation2 + $0xac] sm:$0xf]  ;;  %v2570_v15 = vld [vmem:[#allocation2 + $0xb8] sm:$0xf0]  ;;  %v2557_v38 = vor.u32 %v3667_v26, %v2554_v27 }
  0x75   :  { %v3845_v43 = vld [vmem:[#allocation2 + $0x614] sm:$0xf0]  ;;  %v3208_v18 = vld [vmem:[#allocation2 + $0x5a8] sm:$0xf]  ;;  %v2573_v24 = vor.u32 %v3671_v14, %v2570_v15  ;;  %v2682_v37 = vld [vmem:[#allocation2 + $0x198] sm:$0xf0] }
  0x76   :  { %1470 = vmatpush.bf16.msra.mxu3 %v2729_v19  ;;  %1439 = vmatmul.bf16.vlgmr.msrb.gmra.mxu2 %v4116_v35  ;;  %v2905_v19 = vor.u32 %v3757_v12, %v2904_v11  ;;  %v2714_v11 = vld [vmem:[#allocation2 + $0x1d8] sm:$0xf0]  ;;  %v2589_v12 = vor.u32 %v3675_v1, %v2586_v2  ;;  %v3797_v21 = vld [vmem:[#allocation2 + $0x494] sm:$0xf0]  ;;  %v3032_v47 = vld [vmem:[#allocation2 + $0x448] sm:$0xf] }
  0x77   :  { %1496 = vmatpush.bf16.msra.mxu2 %v2985_v16  ;;  %1485 = vmatpush.bf16.msrb.mxu0 %v2825_v39  ;;  %v2777_v16 = vor.u32 %v3725_v9, %v2776_v8  ;;  %v2872_v39 = vld [vmem:[#allocation2 + $0x308] sm:$0xf]  ;;  %v3801_v9 = vld [vmem:[#allocation2 + $0x4b4] sm:$0xf0]  ;;  %v2650_v1 = vld [vmem:[#allocation2 + $0x158] sm:$0xf0] }
  0x78   :  { %1459 = vmatpush.bf16.msrb.mxu1 %v2569_v36  ;;  %v2616_v36 = vld [vmem:[#allocation2 + $0x108] sm:$0xf]  ;;  %v2873_v56 = vor.u32 %v3749_v41, %v2872_v39  ;;  %v2538_v41 = vld [vmem:[#allocation2 + $0x78] sm:$0xf0]  ;;  %v3789_v48 = vld [vmem:[#allocation2 + $0x454] sm:$0xf0] }
  0x79   :  { %v3080_v8 = vld [vmem:[#allocation2 + $0x4a8] sm:$0xf]  ;;  %v2634_v14 = vld [vmem:[#allocation2 + $0x138] sm:$0xf0] }
  0x7a   :  { %1471 = vmatpush.bf16.msra.mxu3 %v2713_v32  ;;  %v3112_v32 = vld [vmem:[#allocation2 + $0x4e8] sm:$0xf]  ;;  %v2986_v26 = vld [vmem:[#allocation2 + $0x3f8] sm:$0xf0] }
  0x7b   :  { %1497 = vmatpush.bf16.msra.mxu2 %v2969_v28  ;;  %1486 = vmatpush.bf16.msrb.mxu0 %v2809_v53  ;;  %v2488_v28 = vld [vmem:[#allocation2 + $0x8] sm:$0xf]  ;;  %v3841_v53 = vld [vmem:[#allocation2 + $0x5f4] sm:$0xf0] }
  0x7c   :  { %1460 = vmatpush.bf16.msrb.mxu1 %v2553_v49  ;;  %v2489_v44 = vor.u32 %v3653_v31, %v2488_v28  ;;  %v3113_v49 = vor.u32 %v3809_v33, %v3112_v32  ;;  %v3065_v28 = vor.u32 %v3797_v21, %v3064_v20  ;;  %v3192_v31 = vld [vmem:[#allocation2 + $0x588] sm:$0xf]  ;;  %v3829_v32 = vld [vmem:[#allocation2 + $0x594] sm:$0xf0]  ;;  %v3651_v20 = vld [vmem:[#allocation2 + $0xc] sm:$0xf] }
  0x7d   :  { %v3048_v33 = vld [vmem:[#allocation2 + $0x468] sm:$0xf]  ;;  %v3193_v39 = vor.u32 %v3829_v32, %v3192_v31  ;;  %v2490_v21 = vld [vmem:[#allocation2 + $0x18] sm:$0xf0]  ;;  %v3739_v31 = vld [vmem:[#allocation2 + $0x2cc] sm:$0xf] }
  0x7e   :  { %1472 = vmatpush.bf16.msra.mxu3 %v2697_v46  ;;  %v3685_v46 = vld [vmem:[#allocation2 + $0x114] sm:$0xf0]  ;;  %v2493_v32 = vor.u32 %v3651_v20, %v2490_v21  ;;  %v3759_v20 = vld [vmem:[#allocation2 + $0x36c] sm:$0xf] }
  0x7f   :  { %1498 = vmatpush.bf16.msra.mxu2 %v2953_v42  ;;  %1487 = vmatpush.bf16.msrb.mxu0 %v2793_v3  ;;  %v3256_v42 = vld [vmem:[#allocation2 + $0x608] sm:$0xf]  ;;  %v2617_v62 = vor.u32 %v3685_v46, %v2616_v36  ;;  %v3699_v36 = vld [vmem:[#allocation2 + $0x18c] sm:$0xf]  ;;  %v3825_v46 = vld [vmem:[#allocation2 + $0x574] sm:$0xf0] }
  0x80   :  { %1461 = vmatpush.bf16.msrb.mxu1 %v2537_v0  ;;  %v3257_v59 = vor.u32 %v3845_v43, %v3256_v42  ;;  %v3241_v0 = vor.u32 %v3841_v53, %v3240_v52  ;;  %v2685_v43 = vor.u32 %v3699_v36, %v2682_v37  ;;  %v2618_v36 = vld [vmem:[#allocation2 + $0x118] sm:$0xf0] }
  0x81   :  { %3263 = vmatmul.msk.bf16.vlgmr.msrb.gmra.mxu3 %vm1271_vm0, %v4104_v45 }
  0x82   :  { %1473 = vmatpush.bf16.msra.mxu3 %v2681_v61  ;;  %v2730_v61 = vld [vmem:[#allocation2 + $0x1f8] sm:$0xf0] }
  0x83   :  { %1499 = vmatpush.bf16.msra.mxu2 %v2937_v58  ;;  %1488 = vmatpush.bf16.msrb.mxu0 %v2777_v16  ;;  %v3805_v58 = vld [vmem:[#allocation2 + $0x4d4] sm:$0xf0]  ;;  %v2733_v4 = vor.u32 %v3711_v60, %v2730_v61  ;;  %v3081_v16 = vor.u32 %v3801_v9, %v3080_v8  ;;  %v3160_v60 = vld [vmem:[#allocation2 + $0x548] sm:$0xf] }
  0x84   :  { %1462 = vmatpush.bf16.msrb.mxu1 %v2521_v13  ;;  %v3097_v3 = vor.u32 %v3805_v58, %v3096_v54  ;;  %v3659_v54 = vld [vmem:[#allocation2 + $0x4c] sm:$0xf]  ;;  %v3033_v58 = vor.u32 %v3789_v48, %v3032_v47  ;;  %v3821_v61 = vld [vmem:[#allocation2 + $0x554] sm:$0xf0]  ;;  %v3144_v9 = vld [vmem:[#allocation2 + $0x528] sm:$0xf] }
  0x85   :  { %v3803_v47 = vld [vmem:[#allocation2 + $0x4cc] sm:$0xf]  ;;  %v3098_v48 = vld [vmem:[#allocation2 + $0x4d8] sm:$0xf0] }
  0x86   :  { %1474 = vmatpush.bf16.msra.mxu3 %v2665_v10  ;;  %v3707_v10 = vld [vmem:[#allocation2 + $0x1cc] sm:$0xf] }
  0x87   :  { %1500 = vmatpush.bf16.msra.mxu2 %v2921_v6  ;;  %1489 = vmatpush.bf16.msrb.mxu0 %v2761_v29  ;;  %v3837_v6 = vld [vmem:[#allocation2 + $0x5d4] sm:$0xf0]  ;;  %v2717_v17 = vor.u32 %v3707_v10, %v2714_v11  ;;  %v3000_v11 = vld [vmem:[#allocation2 + $0x408] sm:$0xf] }
  0x88   :  { %1463 = vmatpush.bf16.msrb.mxu1 %v2505_v25  ;;  %v3225_v13 = vor.u32 %v3837_v6, %v3224_v5  ;;  %v2506_v5 = vld [vmem:[#allocation2 + $0x38] sm:$0xf0]  ;;  %v3817_v10 = vld [vmem:[#allocation2 + $0x534] sm:$0xf0] }
  0x8a   :  { %1475 = vmatpush.bf16.msra.mxu3 %v2649_v22  ;;  %v3703_v22 = vld [vmem:[#allocation2 + $0x1ac] sm:$0xf] }
  0x8b   :  { %1501 = vmatpush.bf16.msra.mxu2 %v2905_v19  ;;  %1490 = vmatpush.bf16.msrb.mxu0 %v2745_v50  ;;  %v3833_v19 = vld [vmem:[#allocation2 + $0x5b4] sm:$0xf0]  ;;  %v2701_v29 = vor.u32 %v3703_v22, %v2698_v23  ;;  %v2666_v50 = vld [vmem:[#allocation2 + $0x178] sm:$0xf0] }
  0x8c   :  { %1464 = vmatpush.bf16.msrb.mxu1 %v2489_v44  ;;  %v3209_v25 = vor.u32 %v3833_v19, %v3208_v18  ;;  %v3176_v44 = vld [vmem:[#allocation2 + $0x568] sm:$0xf]  ;;  %v3145_v18 = vor.u32 %v3817_v10, %v3144_v9  ;;  %v2938_v10 = vld [vmem:[#allocation2 + $0x398] sm:$0xf0] }
  0x8d   :  { %v3177_v53 = vor.u32 %v3825_v46, %v3176_v44  ;;  %v3128_v19 = vld [vmem:[#allocation2 + $0x508] sm:$0xf]  ;;  %v2970_v46 = vld [vmem:[#allocation2 + $0x3d8] sm:$0xf0] }
  0x8e   :  { %1476 = vmatpush.bf16.msra.mxu3 %v2633_v40  ;;  %1491 = vmatmul.bf16.vlgmr.msrb.gmra.mxu0 %v4086_v51  ;;  %v3663_v40 = vld [vmem:[#allocation2 + $0x6c] sm:$0xf] }
  0x8f   :  { %1502 = vmatpush.bf16.msra.mxu2 %v2889_v34  ;;  %1542 = vmatpush.bf16.msra.mxu0 %v3257_v59  ;;  %v3793_v34 = vld [vmem:[#allocation2 + $0x474] sm:$0xf0]  ;;  %v2541_v52 = vor.u32 %v3663_v40, %v2538_v41 }
  0x90   :  { %1509 = vmatpush.bf16.msra.mxu1 %v3113_v49  ;;  %v3049_v42 = vor.u32 %v3793_v34, %v3048_v33  ;;  %v3695_v49 = vld [vmem:[#allocation2 + $0x16c] sm:$0xf]  ;;  %v2842_v33 = vld [vmem:[#allocation2 + $0x2d8] sm:$0xf0] }
  0x91   :  { %1465 = vmatmul.bf16.vlgmr.msrb.gmra.mxu1 %v4088_v55  ;;  %v2669_v59 = vor.u32 %v3695_v49, %v2666_v50  ;;  %v3683_v34 = vld [vmem:[#allocation2 + $0x10c] sm:$0xf] }
  0x92   :  { %1477 = vmatpush.bf16.msra.mxu3 %v2617_v62  ;;  %v3016_v62 = vld [vmem:[#allocation2 + $0x428] sm:$0xf]  ;;  %v2621_v44 = vor.u32 %v3683_v34, %v2618_v36  ;;  %v3735_v50 = vld [vmem:[#allocation2 + $0x2ac] sm:$0xf] }
  0x93   :  { %1503 = vmatpush.bf16.msra.mxu2 %v2873_v56  ;;  %1561 = vmatpush.bf16.msrb.mxu0 %v2733_v4  ;;  %v2522_v56 = vld [vmem:[#allocation2 + $0x58] sm:$0xf0]  ;;  %v3655_v4 = vld [vmem:[#allocation2 + $0x2c] sm:$0xf] }
  0x94   :  { %1510 = vmatpush.bf16.msra.mxu1 %v3097_v3  ;;  %v2525_v2 = vor.u32 %v3659_v54, %v2522_v56  ;;  %v3161_v3 = vor.u32 %v3821_v61, %v3160_v60  ;;  %v2509_v15 = vor.u32 %v3655_v4, %v2506_v5  ;;  %v3226_v54 = vld [vmem:[#allocation2 + $0x5d8] sm:$0xf0]  ;;  %v3755_v34 = vld [vmem:[#allocation2 + $0x34c] sm:$0xf] }
  0x95   :  { %1478 = vmatmul.bf16.vlgmr.msra.gmra.mxu3 %v4097_v7  ;;  %v2954_v61 = vld [vmem:[#allocation2 + $0x3b8] sm:$0xf0] }
  0x96   :  { %1522 = vmatpush.bf16.msrb.mxu3 %v3241_v0  ;;  %1504 = vmatmul.bf16.vlgmr.msra.gmra.mxu2 %v4090_v57  ;;  %v3691_v0 = vld [vmem:[#allocation2 + $0x14c] sm:$0xf]  ;;  %v3210_v4 = vld [vmem:[#allocation2 + $0x5b8] sm:$0xf0] }
  0x97   :  { %1548 = vmatpush.bf16.msrb.mxu2 %v2605_v63  ;;  %1562 = vmatpush.bf16.msrb.mxu0 %v2717_v17  ;;  %v3785_v63 = vld [vmem:[#allocation2 + $0x434] sm:$0xf0]  ;;  %v2653_v8 = vor.u32 %v3691_v0, %v2650_v1  ;;  %v2858_v17 = vld [vmem:[#allocation2 + $0x2f8] sm:$0xf0]  ;;  %v3731_v1 = vld [vmem:[#allocation2 + $0x28c] sm:$0xf] }
  0x98   :  { %1511 = vmatpush.bf16.msra.mxu1 %v3081_v16  ;;  %v3017_v6 = vor.u32 %v3785_v63, %v3016_v62  ;;  %v3743_v16 = vld [vmem:[#allocation2 + $0x2ec] sm:$0xf]  ;;  %v3082_v63 = vld [vmem:[#allocation2 + $0x4b8] sm:$0xf0] }
  0x99   :  { %v2861_v27 = vor.u32 %v3743_v16, %v2858_v17  ;;  %v3799_v62 = vld [vmem:[#allocation2 + $0x4ac] sm:$0xf]  ;;  %v3194_v17 = vld [vmem:[#allocation2 + $0x598] sm:$0xf0] }
  0x9a   :  { %1523 = vmatpush.bf16.msrb.mxu3 %v3225_v13  ;;  %v3687_v13 = vld [vmem:[#allocation2 + $0x12c] sm:$0xf] }
  0x9b   :  { %1549 = vmatpush.bf16.msrb.mxu2 %v2589_v12  ;;  %1563 = vmatpush.bf16.msrb.mxu0 %v2701_v29  ;;  %v3781_v12 = vld [vmem:[#allocation2 + $0x414] sm:$0xf0]  ;;  %v2637_v23 = vor.u32 %v3687_v13, %v2634_v14  ;;  %v3114_v29 = vld [vmem:[#allocation2 + $0x4f8] sm:$0xf0]  ;;  %v3727_v14 = vld [vmem:[#allocation2 + $0x26c] sm:$0xf] }
  0x9c   :  { %1512 = vmatpush.bf16.msra.mxu1 %v3065_v28  ;;  %v3001_v22 = vor.u32 %v3781_v12, %v3000_v11  ;;  %v3807_v28 = vld [vmem:[#allocation2 + $0x4ec] sm:$0xf]  ;;  %v3066_v12 = vld [vmem:[#allocation2 + $0x498] sm:$0xf0] }
  0x9d   :  { %v3117_v41 = vor.u32 %v3807_v28, %v3114_v29  ;;  %v3795_v11 = vld [vmem:[#allocation2 + $0x48c] sm:$0xf]  ;;  %v3178_v29 = vld [vmem:[#allocation2 + $0x578] sm:$0xf0] }
  0x9e   :  { %1524 = vmatpush.bf16.msrb.mxu3 %v3209_v25  ;;  %3264 = vmatmul.msk.bf16.vlgmr.msra.gmra.mxu0 %vm1271_vm0, %v4104_v45  ;;  %v3775_v25 = vld [vmem:[#allocation2 + $0x3ec] sm:$0xf] }
  0x9f   :  { %1550 = vmatpush.bf16.msrb.mxu2 %v2573_v24  ;;  %1564 = vmatpush.bf16.msrb.mxu0 %v2685_v43  ;;  %v3813_v24 = vld [vmem:[#allocation2 + $0x514] sm:$0xf0]  ;;  %v2989_v40 = vor.u32 %v3775_v25, %v2986_v26  ;;  %v2845_v43 = vor.u32 %v3739_v31, %v2842_v33  ;;  %v3723_v26 = vld [vmem:[#allocation2 + $0x24c] sm:$0xf] }
  0xa0   :  { %1513 = vmatpush.bf16.msra.mxu1 %v3049_v42  ;;  %v3129_v37 = vor.u32 %v3813_v24, %v3128_v19  ;;  %v3771_v42 = vld [vmem:[#allocation2 + $0x3cc] sm:$0xf]  ;;  %v3069_v19 = vor.u32 %v3795_v11, %v3066_v12  ;;  %v3050_v24 = vld [vmem:[#allocation2 + $0x478] sm:$0xf0] }
  0xa1   :  { %v2973_v56 = vor.u32 %v3771_v42, %v2970_v46  ;;  %v3823_v28 = vld [vmem:[#allocation2 + $0x56c] sm:$0xf]  ;;  %v3002_v11 = vld [vmem:[#allocation2 + $0x418] sm:$0xf0] }
  0xa2   :  { %1525 = vmatpush.bf16.msrb.mxu3 %v3193_v39  ;;  %v3242_v39 = vld [vmem:[#allocation2 + $0x5f8] sm:$0xf0]  ;;  %v3719_v42 = vld [vmem:[#allocation2 + $0x22c] sm:$0xf] }
  0xa3   :  { %1551 = vmatpush.bf16.msrb.mxu2 %v2557_v38  ;;  %1565 = vmatpush.bf16.msrb.mxu0 %v2669_v59  ;;  %v3839_v38 = vld [vmem:[#allocation2 + $0x5ec] sm:$0xf] }
  0xa4   :  { %1514 = vmatpush.bf16.msra.mxu1 %v3033_v58  ;;  %v3245_v49 = vor.u32 %v3839_v38, %v3242_v39  ;;  %v3101_v58 = vor.u32 %v3803_v47, %v3098_v48  ;;  %v3767_v59 = vld [vmem:[#allocation2 + $0x3ac] sm:$0xf]  ;;  %v2906_v38 = vld [vmem:[#allocation2 + $0x358] sm:$0xf0] }
  0xa5   :  { %v2957_v5 = vor.u32 %v3767_v59, %v2954_v61  ;;  %v3787_v39 = vld [vmem:[#allocation2 + $0x44c] sm:$0xf]  ;;  %v3162_v47 = vld [vmem:[#allocation2 + $0x558] sm:$0xf0]  ;;  %v2909_v48 = vor.u32 %v3755_v34, %v2906_v38  ;;  %v3308_v38 = vld [vmem:[#allocation4 + $0x50] sm:$0xf] }
  0xa6   :  { %1526 = vmatpush.bf16.msrb.mxu3 %v3177_v53  ;;  %v3835_v53 = vld [vmem:[#allocation2 + $0x5cc] sm:$0xf] }
  0xa7   :  { %1552 = vmatpush.bf16.msrb.mxu2 %v2541_v52  ;;  %1566 = vmatpush.bf16.msrb.mxu0 %v2653_v8  ;;  %v2826_v52 = vld [vmem:[#allocation2 + $0x2b8] sm:$0xf0]  ;;  %v3229_v0 = vor.u32 %v3835_v53, %v3226_v54  ;;  %v3763_v8 = vld [vmem:[#allocation2 + $0x38c] sm:$0xf] }
  0xa8   :  { %1515 = vmatpush.bf16.msra.mxu1 %v3017_v6  ;;  %v2829_v60 = vor.u32 %v3735_v50, %v2826_v52  ;;  %v3085_v6 = vor.u32 %v3799_v62, %v3082_v63  ;;  %v3819_v46 = vld [vmem:[#allocation2 + $0x54c] sm:$0xf]  ;;  %v2890_v53 = vld [vmem:[#allocation2 + $0x338] sm:$0xf0] }
  0xa9   :  { %v3751_v50 = vld [vmem:[#allocation2 + $0x32c] sm:$0xf]  ;;  %v3146_v63 = vld [vmem:[#allocation2 + $0x538] sm:$0xf0] }
  0xaa   :  { %1527 = vmatpush.bf16.msrb.mxu3 %v3161_v3  ;;  %v3831_v3 = vld [vmem:[#allocation2 + $0x5ac] sm:$0xf] }
  0xab   :  { %1553 = vmatpush.bf16.msrb.mxu2 %v2525_v2  ;;  %1567 = vmatpush.bf16.msrb.mxu0 %v2637_v23  ;;  %v2810_v2 = vld [vmem:[#allocation2 + $0x298] sm:$0xf0]  ;;  %v3213_v13 = vor.u32 %v3831_v3, %v3210_v4  ;;  %v3791_v23 = vld [vmem:[#allocation2 + $0x46c] sm:$0xf]  ;;  %v2893_v4 = vor.u32 %v3751_v50, %v2890_v53 }
  0xac   :  { %1516 = vmatpush.bf16.msra.mxu1 %v3001_v22  ;;  %v2813_v9 = vor.u32 %v3731_v1, %v2810_v2  ;;  %v2922_v22 = vld [vmem:[#allocation2 + $0x378] sm:$0xf0]  ;;  %v4140_v25 = vpop.f32.mrf.mxu1  ;;  %v3053_v33 = vor.u32 %v3791_v23, %v3050_v24  ;;  %v3783_v54 = vld [vmem:[#allocation2 + $0x42c] sm:$0xf]  ;;  %v4149_v2 = vld [vmem:[%s4291_s2] sm:$0xf] }
  0xad   :  { %v3715_v59 = vld [vmem:[#allocation2 + $0x20c] sm:$0xf]  ;;  %v3258_v1 = vld [vmem:[#allocation2 + $0x618] sm:$0xf0] }
  0xae   :  { %1528 = vmatpush.bf16.msrb.mxu3 %v3145_v18  ;;  %v2941_v18 = vor.u32 %v3763_v8, %v2938_v10  ;;  %v3815_v61 = vld [vmem:[#allocation2 + $0x52c] sm:$0xf] }
  0xaf   :  { %1554 = vmatpush.bf16.msrb.mxu2 %v2509_v15  ;;  %1517 = vmatmul.bf16.vlgmr.msra.gmra.mxu1 %v4114_v30  ;;  %v2794_v15 = vld [vmem:[#allocation2 + $0x278] sm:$0xf0]  ;;  %v4138_v16 = vpop.f32.mrf.mxu0  ;;  %v3779_v10 = vld [vmem:[#allocation2 + $0x40c] sm:$0xf] }
  0xb0   :  { %1574 = vmatpush.bf16.msrb.mxu1 %v2861_v27  ;;  %1568 = vmatpush.bf16.msrb.mxu0 %v2621_v44  ;;  %v2797_v21 = vor.u32 %v3727_v14, %v2794_v15  ;;  %v2778_v27 = vld [vmem:[#allocation2 + $0x258] sm:$0xf0]  ;;  %v3324_v15 = vld [vmem:[#allocation4 + $0x70] sm:$0xf]  ;;  %v3005_v23 = vor.u32 %v3779_v10, %v3002_v11 }
  0xb1   :  { %v2781_v36 = vor.u32 %v3723_v26, %v2778_v27  ;;  %v3316_v26 = vld [vmem:[#allocation4 + $0x60] sm:$0xf]  ;;  %v3859_v27 = vld [vmem:[#allocation4 + $0x64] sm:$0xf0]  ;;  %v3340_v11 = vld [vmem:[#allocation4 + $0x90] sm:$0xf] }
  0xb2   :  { %1529 = vmatpush.bf16.msrb.mxu3 %v3129_v37 }
  0xb3   :  { %1555 = vmatpush.bf16.msrb.mxu2 %v2493_v32  ;;  %1569 = vmatmul.bf16.vlgmr.msrb.gmra.mxu0 %v4097_v7  ;;  %v2925_v32 = vor.u32 %v3759_v20, %v2922_v22  ;;  %v3877_v20 = vld [vmem:[#allocation4 + $0xf4] sm:$0xf0] }
  0xb4   :  { %1575 = vmatpush.bf16.msrb.mxu1 %v2845_v43  ;;  %1613 = vmatpush.bf16.msra.mxu0 %v3245_v49  ;;  %v4142_v31 = vpop.f32.mrf.mxu2  ;;  %v4144_v37 = vpop.f32.mrf.mxu3  ;;  %v2762_v43 = vld [vmem:[#allocation2 + $0x238] sm:$0xf0] }
  0xb5   :  { %1530 = vmatmul.bf16.vlgmr.msrb.gmra.mxu3 %v4116_v35  ;;  %v2765_v52 = vor.u32 %v3719_v42, %v2762_v43  ;;  %v1299_v62 = vpop.f32.mrf.mxu1  ;;  %v3873_v42 = vld [vmem:[#allocation4 + $0xd4] sm:$0xf0] }
  0xb6   :  { %1587 = vmatpush.bf16.msra.mxu3 %v2989_v40  ;;  %1556 = vmatmul.bf16.vlgmr.msrb.gmra.mxu2 %v4088_v55  ;;  %v3827_v55 = vld [vmem:[#allocation2 + $0x58c] sm:$0xf]  ;;  %v3034_v40 = vld [vmem:[#allocation2 + $0x458] sm:$0xf0]  ;;  %v3851_v62 = vld [vmem:[#allocation4 + $0x24] sm:$0xf0] }
  0xb7   :  { %1600 = vmatpush.bf16.msra.mxu2 %v3117_v41  ;;  %v3197_v7 = vor.u32 %v3827_v55, %v3194_v17  ;;  %v3181_v41 = vor.u32 %v3823_v28, %v3178_v29  ;;  %v1286_v44 = vpop.f32.mrf.mxu0  ;;  %v3037_v49 = vor.u32 %v3787_v39, %v3034_v40  ;;  %v3861_v55 = vld [vmem:[#allocation4 + $0x74] sm:$0xf0]  ;;  %v3811_v17 = vld [vmem:[#allocation2 + $0x50c] sm:$0xf]  ;;  %v3380_v29 = vld [vmem:[#allocation4 + $0xe0] sm:$0xf] }
  0xb8   :  { %1576 = vmatpush.bf16.msrb.mxu1 %v2829_v60  ;;  %1614 = vmatpush.bf16.msra.mxu0 %v3229_v0  ;;  %v2746_v60 = vld [vmem:[#allocation2 + $0x218] sm:$0xf0]  ;;  %v3843_v0 = vld [vmem:[#allocation2 + $0x60c] sm:$0xf]  ;;  %v3325_v24 = vor.u32 %v3861_v55, %v3324_v15  ;;  %v3857_v39 = vld [vmem:[#allocation4 + $0x54] sm:$0xf0] }
  0xb9   :  { %v2749_v8 = vor.u32 %v3715_v59, %v2746_v60  ;;  %v3261_v14 = vor.u32 %v3843_v0, %v3258_v1  ;;  %v3855_v44 = vld [vmem:[#allocation4 + $0x44] sm:$0xf0]  ;;  %v3348_v1 = vld [vmem:[#allocation4 + $0xa0] sm:$0xf] }
  0xba   :  { %1588 = vmatpush.bf16.msra.mxu3 %v2973_v56  ;;  %v3018_v56 = vld [vmem:[#allocation2 + $0x438] sm:$0xf0]  ;;  %v3268_v15 = vld [vmem:[#allocation4] sm:$0xf]  ;;  %v3847_v55 = vld [vmem:[#allocation4 + $0x4] sm:$0xf0] }
  0xbb   :  { %1601 = vmatpush.bf16.msra.mxu2 %v3101_v58  ;;  %v3165_v58 = vor.u32 %v3819_v46, %v3162_v47 }
  0xbc   :  { %1577 = vmatpush.bf16.msrb.mxu1 %v2813_v9  ;;  %1615 = vmatpush.bf16.msra.mxu0 %v3213_v13  ;;  %v1312_v3 = vpop.f32.mrf.mxu2  ;;  %v2874_v9 = vld [vmem:[#allocation2 + $0x318] sm:$0xf0]  ;;  %v1325_v12 = vpop.f32.mrf.mxu3  ;;  %v3149_v13 = vor.u32 %v3815_v61, %v3146_v63  ;;  %v3284_v61 = vld [vmem:[#allocation4 + $0x20] sm:$0xf] }
  0xbd   :  { %v3867_v3 = vld [vmem:[#allocation4 + $0xa4] sm:$0xf0]  ;;  %v3865_v12 = vld [vmem:[#allocation4 + $0x94] sm:$0xf0] }
  0xbe   :  { %1589 = vmatpush.bf16.msra.mxu3 %v2957_v5  ;;  %v3021_v5 = vor.u32 %v3783_v54, %v3018_v56  ;;  %v3853_v54 = vld [vmem:[#allocation4 + $0x34] sm:$0xf0]  ;;  %v3356_v56 = vld [vmem:[#allocation4 + $0xb0] sm:$0xf]  ;;  %v3349_v10 = vor.u32 %v3867_v3, %v3348_v1  ;;  %v3850_v3 = vld [vmem:[#allocation4 + $0x24] sm:$0xf] }
  0xbf   :  { %1602 = vmatpush.bf16.msra.mxu2 %v3085_v6  ;;  %v3747_v6 = vld [vmem:[#allocation2 + $0x30c] sm:$0xf] }
  0xc0   :  { %1578 = vmatpush.bf16.msrb.mxu1 %v2797_v21  ;;  %1616 = vmatpush.bf16.msra.mxu0 %v3197_v7  ;;  %v283_v21 = vperm.slane %v4149_v2, 0  ;;  %v2877_v22 = vor.u32 %v3747_v6, %v2874_v9  ;;  %v3849_v9 = vld [vmem:[#allocation4 + $0x14] sm:$0xf0] }
  0xc2   :  { %1590 = vmatpush.bf16.msra.mxu3 %v2941_v18  ;;  %v3130_v18 = vld [vmem:[#allocation2 + $0x518] sm:$0xf0] }
  0xc3   :  { %1603 = vmatpush.bf16.msra.mxu2 %v3069_v19  ;;  %v3388_v19 = vld [vmem:[#allocation4 + $0xf0] sm:$0xf]  ;;  %v3133_v7 = vor.u32 %v3811_v17, %v3130_v18  ;;  %v3860_v17 = vld [vmem:[#allocation4 + $0x74] sm:$0xf] }
  0xc4   :  { %1579 = vmatpush.bf16.msrb.mxu1 %v2781_v36  ;;  %1617 = vmatpush.bf16.msra.mxu0 %v3181_v41  ;;  %v3389_v28 = vor.u32 %v3877_v20, %v3388_v19  ;;  %v1362_v34 = vpop.f32.mrf.mxu2  ;;  %v3317_v36 = vor.u32 %v3859_v27, %v3316_v26  ;;  %v3372_v41 = vld [vmem:[#allocation4 + $0xd0] sm:$0xf]  ;;  %v3326_v19 = vld [vmem:[#allocation4 + $0x78] sm:$0xf0]  ;;  %v3332_v20 = vld [vmem:[#allocation4 + $0x80] sm:$0xf] }
  0xc5   :  { %v3373_v46 = vor.u32 %v3873_v42, %v3372_v41  ;;  %v3329_v27 = vor.u32 %v3860_v17, %v3326_v19  ;;  %v3310_v41 = vld [vmem:[#allocation4 + $0x58] sm:$0xf0]  ;;  %v3848_v17 = vld [vmem:[#allocation4 + $0x14] sm:$0xf] }
  0xc6   :  { %1591 = vmatpush.bf16.msra.mxu3 %v2925_v32  ;;  %v3875_v32 = vld [vmem:[#allocation4 + $0xe4] sm:$0xf0]  ;;  %v3864_v19 = vld [vmem:[#allocation4 + $0x94] sm:$0xf] }
  0xc7   :  { %1604 = vmatpush.bf16.msra.mxu2 %v3053_v33  ;;  %v1285_v33 = vadd.f32 %v4138_v16, %v283_v21  ;;  %v3381_v40 = vor.u32 %v3875_v32, %v3380_v29  ;;  %v3300_v16 = vld [vmem:[#allocation4 + $0x40] sm:$0xf]  ;;  %v3863_v21 = vld [vmem:[#allocation4 + $0x84] sm:$0xf0]  ;;  %v3858_v29 = vld [vmem:[#allocation4 + $0x64] sm:$0xf] }
  0xc8   :  { %1580 = vmatpush.bf16.msrb.mxu1 %v2765_v52  ;;  %1618 = vmatpush.bf16.msra.mxu0 %v3165_v58  ;;  %v3301_v53 = vor.u32 %v3855_v44, %v3300_v16  ;;  %v3318_v32 = vld [vmem:[#allocation4 + $0x68] sm:$0xf0]  ;;  %v3854_v44 = vld [vmem:[#allocation4 + $0x44] sm:$0xf] }
  0xc9   :  { %v1298_v43 = vadd.f32 %v4140_v25, %v1285_v33  ;;  %v3292_v25 = vld [vmem:[#allocation4 + $0x30] sm:$0xf] }
  0xca   :  { %1592 = vmatpush.bf16.msra.mxu3 %v2909_v48  ;;  %v3364_v48 = vld [vmem:[#allocation4 + $0xc0] sm:$0xf]  ;;  %v3293_v59 = vor.u32 %v3853_v54, %v3292_v25  ;;  %v3891_v54 = vld [vmem:[#allocation4 + $0x164] sm:$0xf0] }
  0xcb   :  { %1605 = vmatpush.bf16.msra.mxu2 %v3037_v49  ;;  %v1336_v47 = vpop.f32.mrf.mxu0  ;;  %v3871_v49 = vld [vmem:[#allocation4 + $0xc4] sm:$0xf0]  ;;  %v1311_v50 = vadd.f32 %v4142_v31, %v1298_v43  ;;  %v3872_v43 = vld [vmem:[#allocation4 + $0xd4] sm:$0xf]  ;;  %v3444_v25 = vld [vmem:[#allocation4 + $0x160] sm:$0xf] }
  0xcc   :  { %1581 = vmatpush.bf16.msrb.mxu1 %v2749_v8  ;;  %1619 = vmatpush.bf16.msra.mxu0 %v3149_v13  ;;  %v1364_v52 = vpop.f32.mrf.mxu2  ;;  %v3276_v8 = vld [vmem:[#allocation4 + $0x10] sm:$0xf] }
  0xcd   :  { %v1324_v58 = vadd.f32 %v4144_v37, %v1311_v50  ;;  %v3277_v13 = vor.u32 %v3849_v9, %v3276_v8  ;;  %v3452_v50 = vld [vmem:[#allocation4 + $0x170] sm:$0xf]  ;;  %v3350_v9 = vld [vmem:[#allocation4 + $0xa8] sm:$0xf0] }
  0xce   :  { %1593 = vmatpush.bf16.msra.mxu3 %v2893_v4 }
  0xcf   :  { %1606 = vmatpush.bf16.msra.mxu2 %v3021_v5  ;;  %1582 = vmatmul.bf16.vlgmr.msrb.gmra.mxu1 %v4086_v51  ;;  %v3309_v51 = vor.u32 %v3857_v39, %v3308_v38  ;;  %v1337_v60 = vadd.f32 %v1336_v47, %v1324_v58  ;;  %v3285_v5 = vor.u32 %v3851_v62, %v3284_v61  ;;  %v3852_v58 = vld [vmem:[#allocation4 + $0x34] sm:$0xf] }
  0xd0   :  { %1633 = vmatpush.bf16.msra.mxu1 %v3261_v14  ;;  %1620 = vmatpush.bf16.msra.mxu0 %v3133_v7  ;;  %v3321_v39 = vor.u32 %v3858_v29, %v3318_v32  ;;  %v3445_v61 = vor.u32 %v3891_v54, %v3444_v25  ;;  %v3868_v62 = vld [vmem:[#allocation4 + $0xb4] sm:$0xf]  ;;  %v3862_v29 = vld [vmem:[#allocation4 + $0x84] sm:$0xf]  ;;  %v3885_v32 = vld [vmem:[#allocation4 + $0x134] sm:$0xf0] }
  0xd1   :  { %v3879_v25 = vld [vmem:[#allocation4 + $0x104] sm:$0xf0] }
  0xd2   :  { %1594 = vmatpush.bf16.msra.mxu3 %v2877_v22  ;;  %v3876_v22 = vld [vmem:[#allocation4 + $0xf4] sm:$0xf] }
  0xd3   :  { %1607 = vmatpush.bf16.msra.mxu2 %v3005_v23  ;;  %1621 = vmatmul.bf16.vlgmr.msra.gmra.mxu0 %v4116_v35  ;;  %v3869_v35 = vld [vmem:[#allocation4 + $0xb4] sm:$0xf0]  ;;  %v1338_v0 = vpop.f32.mrf.mxu0  ;;  %v3390_v23 = vld [vmem:[#allocation4 + $0xf8] sm:$0xf0] }
  0xd4   :  { %2050 = vmatpush.bf16.msrb.mxu1 %v3389_v28  ;;  %v3357_v63 = vor.u32 %v3869_v35, %v3356_v56  ;;  %v4160_v31 = vpop.f32.mrf.mxu3  ;;  %v3333_v28 = vor.u32 %v3863_v21, %v3332_v20  ;;  %v3393_v33 = vor.u32 %v3876_v22, %v3390_v23  ;;  %v284_v56 = vperm.slane %v4149_v2, 1  ;;  %v3342_v20 = vld [vmem:[#allocation4 + $0x98] sm:$0xf0]  ;;  %v3428_v21 = vld [vmem:[#allocation4 + $0x140] sm:$0xf] }
  0xd5   :  { %1595 = vmatmul.bf16.vlgmr.msra.gmra.mxu3 %v4090_v57  ;;  %v1349_v57 = vpop.f32.mrf.mxu1  ;;  %v3887_v22 = vld [vmem:[#allocation4 + $0x144] sm:$0xf0] }
  0xd6   :  { %2037 = vmatpush.bf16.msrb.mxu3 %v3325_v24  ;;  %1608 = vmatmul.bf16.vlgmr.msra.gmra.mxu2 %v4114_v30  ;;  %v3365_v30 = vor.u32 %v3871_v49, %v3364_v48  ;;  %v1350_v37 = vadd.f32 %v1349_v57, %v1337_v60  ;;  %v3269_v24 = vor.u32 %v3847_v55, %v3268_v15  ;;  %v3870_v48 = vld [vmem:[#allocation4 + $0xc4] sm:$0xf]  ;;  %v3366_v49 = vld [vmem:[#allocation4 + $0xc8] sm:$0xf0]  ;;  %v3893_v57 = vld [vmem:[#allocation4 + $0x174] sm:$0xf0] }
  0xd7   :  { %v3369_v60 = vor.u32 %v3870_v48, %v3366_v49  ;;  %v1376_v1 = vadd.f32 %v4160_v31, %v284_v56  ;;  %v3892_v56 = vld [vmem:[#allocation4 + $0x174] sm:$0xf] }
  0xd8   :  { %2051 = vmatpush.bf16.msrb.mxu1 %v3381_v40  ;;  %v1363_v14 = vadd.f32 %v1362_v34, %v1350_v37  ;;  %v3874_v34 = vld [vmem:[#allocation4 + $0xe4] sm:$0xf]  ;;  %v3856_v40 = vld [vmem:[#allocation4 + $0x54] sm:$0xf] }
  0xd9   :  { %v4164_v6 = vpop.f32.mrf.mxu2  ;;  %v3313_v16 = vor.u32 %v3856_v40, %v3310_v41  ;;  %v3866_v37 = vld [vmem:[#allocation4 + $0xa4] sm:$0xf]  ;;  %v3883_v40 = vld [vmem:[#allocation4 + $0x124] sm:$0xf0] }
  0xda   :  { %2038 = vmatpush.bf16.msrb.mxu3 %v3317_v36  ;;  %v1639_v26 = vmax.f32 %v1363_v14, 0.0  ;;  %v3382_v36 = vld [vmem:[#allocation4 + $0xe8] sm:$0xf0]  ;;  %v1389_v55 = vadd.f32 %v4164_v6, %v1376_v1  ;;  %v3420_v6 = vld [vmem:[#allocation4 + $0x130] sm:$0xf] }
  0xdb   :  { %v3385_v42 = vor.u32 %v3874_v34, %v3382_v36  ;;  %v3334_v34 = vld [vmem:[#allocation4 + $0x88] sm:$0xf0]  ;;  %v3421_v36 = vor.u32 %v3885_v32, %v3420_v6 }
  0xdc   :  { %2052 = vmatpush.bf16.msrb.mxu1 %v3373_v46  ;;  %v1377_v18 = vpop.f32.mrf.mxu3  ;;  %v4166_v38 = vpack.c.bf16 %v1639_v26, %v1639_v26  ;;  %v3302_v46 = vld [vmem:[#allocation4 + $0x48] sm:$0xf0]  ;;  %v3846_v26 = vld [vmem:[#allocation4 + $0x4] sm:$0xf] }
  0xdd   :  { %v1351_v4 = vpop.f32.mrf.mxu1  ;;  %v3353_v18 = vor.u32 %v3866_v37, %v3350_v9  ;;  %v3907_v9 = vld [vmem:[#allocation4 + $0x1e4] sm:$0xf0] }
  0xde   :  { %2039 = vmatpush.bf16.msrb.mxu3 %v3309_v51  ;;  %v3374_v51 = vld [vmem:[#allocation4 + $0xd8] sm:$0xf0]  ;;  %v3286_v4 = vld [vmem:[#allocation4 + $0x28] sm:$0xf0] }
  0xdf   :  { %3265 = vmatmul.msk.bf16.vlgmr.msra.gmra.mxu1 %vm1271_vm0, %v4104_v45  ;;  %v3341_v45 = vor.u32 %v3865_v12, %v3340_v11  ;;  %v3377_v47 = vor.u32 %v3872_v43, %v3374_v51  ;;  %v3889_v11 = vld [vmem:[#allocation4 + $0x154] sm:$0xf0]  ;;  %v3289_v15 = vor.u32 %v3850_v3, %v3286_v4  ;;  %v3888_v4 = vld [vmem:[#allocation4 + $0x154] sm:$0xf] }
  0xe0   :  { %2053 = vmatpush.bf16.msrb.mxu1 %v3365_v30  ;;  %v3305_v30 = vor.u32 %v3854_v44, %v3302_v46  ;;  %v3404_v46 = vld [vmem:[#allocation4 + $0x110] sm:$0xf] }
  0xe1   :  { %v1390_v7 = vpop.f32.mrf.mxu2 }
  0xe2   :  { %2040 = vmatpush.bf16.msrb.mxu3 %v3301_v53  ;;  %v3453_v53 = vor.u32 %v3893_v57, %v3452_v50 }
  0xe4   :  { %2054 = vmatpush.bf16.msrb.mxu1 %v3357_v63  ;;  %2063 = vmatpush.bf16.msrb.mxu2 %v3453_v53  ;;  %v3358_v63 = vld [vmem:[#allocation4 + $0xb8] sm:$0xf0]  ;;  %v3396_v53 = vld [vmem:[#allocation4 + $0x100] sm:$0xf] }
  0xe6   :  { %2041 = vmatpush.bf16.msrb.mxu3 %v3293_v59  ;;  %v3294_v59 = vld [vmem:[#allocation4 + $0x38] sm:$0xf0] }
  0xe7   :  { %v3297_v0 = vor.u32 %v3852_v58, %v3294_v59  ;;  %v3890_v58 = vld [vmem:[#allocation4 + $0x164] sm:$0xf] }
  0xe8   :  { %2055 = vmatpush.bf16.msrb.mxu1 %v3349_v10  ;;  %2064 = vmatpush.bf16.msrb.mxu2 %v3445_v61  ;;  %v3436_v10 = vld [vmem:[#allocation4 + $0x150] sm:$0xf] }
  0xe9   :  { %v3516_v61 = vld [vmem:[#allocation4 + $0x1f0] sm:$0xf] }
  0xea   :  { %2042 = vmatpush.bf16.msrb.mxu3 %v3285_v5  ;;  %v3361_v5 = vor.u32 %v3868_v62, %v3358_v63  ;;  %v3909_v62 = vld [vmem:[#allocation4 + $0x1f4] sm:$0xf0] }
  0xeb   :  { %v1401_v52 = vpop.f32.mrf.mxu0  ;;  %v3517_v63 = vor.u32 %v3909_v62, %v3516_v61  ;;  %v3906_v62 = vld [vmem:[#allocation4 + $0x1e4] sm:$0xf] }
  0xec   :  { %2056 = vmatpush.bf16.msrb.mxu1 %v3341_v45  ;;  %v3278_v45 = vld [vmem:[#allocation4 + $0x18] sm:$0xf0]  ;;  %v1402_v23 = vadd.f32 %v1401_v52, %v1389_v55 }
  0xed   :  { %v3281_v7 = vor.u32 %v3848_v17, %v3278_v45  ;;  %2076 = vmatpush.bf16.msrb.mxu0 %v3517_v63  ;;  %v3500_v45 = vld [vmem:[#allocation4 + $0x1d0] sm:$0xf]  ;;  %v3510_v63 = vld [vmem:[#allocation4 + $0x1e8] sm:$0xf0] }
  0xee   :  { %2043 = vmatpush.bf16.msrb.mxu3 %v3277_v13  ;;  %v1414_v35 = vpop.f32.mrf.mxu1  ;;  %v3437_v13 = vor.u32 %v3889_v11, %v3436_v10 }
  0xef   :  { %v1415_v41 = vadd.f32 %v1414_v35, %v1402_v23  ;;  %v3454_v35 = vld [vmem:[#allocation4 + $0x178] sm:$0xf0]  ;;  %v3903_v23 = vld [vmem:[#allocation4 + $0x1c4] sm:$0xf0] }
  0xf0   :  { %2057 = vmatpush.bf16.msrb.mxu1 %v3333_v28  ;;  %2065 = vmatpush.bf16.msrb.mxu2 %v3437_v13  ;;  %v3345_v28 = vor.u32 %v3864_v19, %v3342_v20  ;;  %v3457_v59 = vor.u32 %v3892_v56, %v3454_v35  ;;  %v3886_v13 = vld [vmem:[#allocation4 + $0x144] sm:$0xf]  ;;  %v3884_v19 = vld [vmem:[#allocation4 + $0x134] sm:$0xf]  ;;  %v3422_v20 = vld [vmem:[#allocation4 + $0x138] sm:$0xf0] }
  0xf1   :  { %v3908_v35 = vld [vmem:[#allocation4 + $0x1f4] sm:$0xf] }
  0xf2   :  { %2044 = vmatpush.bf16.msrb.mxu3 %v3269_v24  ;;  %v3429_v24 = vor.u32 %v3887_v22, %v3428_v21  ;;  %v3425_v21 = vor.u32 %v3884_v19, %v3422_v20  ;;  %v3492_v22 = vld [vmem:[#allocation4 + $0x1c0] sm:$0xf]  ;;  %v3898_v20 = vld [vmem:[#allocation4 + $0x1a4] sm:$0xf] }
  0xf3   :  { %v1403_v12 = vpop.f32.mrf.mxu0 }
  0xf4   :  { %2102 = vmatpush.bf16.msra.mxu1 %v3393_v33  ;;  %v1427_v8 = vpop.f32.mrf.mxu3  ;;  %2066 = vmatpush.bf16.msrb.mxu2 %v3429_v24  ;;  %v3882_v24 = vld [vmem:[#allocation4 + $0x124] sm:$0xf] }
  0xf5   :  { %2045 = vmatmul.bf16.vlgmr.msrb.gmra.mxu3 %v4166_v38  ;;  %v1428_v51 = vadd.f32 %v1427_v8, %v1415_v41  ;;  %v3508_v8 = vld [vmem:[#allocation4 + $0x1e0] sm:$0xf] }
  0xf6   :  { %2089 = vmatpush.bf16.msra.mxu3 %v3329_v27  ;;  %v1416_v31 = vpop.f32.mrf.mxu1  ;;  %v3270_v27 = vld [vmem:[#allocation4 + $0x8] sm:$0xf0]  ;;  %v3509_v10 = vor.u32 %v3907_v9, %v3508_v8  ;;  %v3476_v41 = vld [vmem:[#allocation4 + $0x1a0] sm:$0xf]  ;;  %v3502_v8 = vld [vmem:[#allocation4 + $0x1d8] sm:$0xf0] }
  0xf7   :  { %v3905_v31 = vld [vmem:[#allocation4 + $0x1d4] sm:$0xf0] }
  0xf8   :  { %2103 = vmatpush.bf16.msra.mxu1 %v3385_v42  ;;  %v3273_v42 = vor.u32 %v3846_v26, %v3270_v27  ;;  %2067 = vmatpush.bf16.msrb.mxu2 %v3421_v36  ;;  %v3414_v26 = vld [vmem:[#allocation4 + $0x128] sm:$0xf0]  ;;  %v3484_v27 = vld [vmem:[#allocation4 + $0x1b0] sm:$0xf]  ;;  %v3406_v36 = vld [vmem:[#allocation4 + $0x118] sm:$0xf0] }
  0xf9   :  { %v1440_v14 = vpop.f32.mrf.mxu2  ;;  %2077 = vmatpush.bf16.msrb.mxu0 %v3509_v10  ;;  %v3417_v32 = vor.u32 %v3882_v24, %v3414_v26  ;;  %v3470_v24 = vld [vmem:[#allocation4 + $0x198] sm:$0xf0] }
  0xfa   :  { %2090 = vmatpush.bf16.msra.mxu3 %v3321_v39  ;;  %v3412_v39 = vld [vmem:[#allocation4 + $0x120] sm:$0xf]  ;;  %v1441_v48 = vadd.f32 %v1440_v14, %v1428_v51  ;;  %v3430_v14 = vld [vmem:[#allocation4 + $0x148] sm:$0xf0] }
  0xfb   :  { %v3413_v44 = vor.u32 %v3883_v40, %v3412_v39  ;;  %v3433_v17 = vor.u32 %v3886_v13, %v3430_v14  ;;  %v285_v39 = vperm.slane %v4149_v2, 2  ;;  %v3902_v13 = vld [vmem:[#allocation4 + $0x1c4] sm:$0xf]  ;;  %v3494_v14 = vld [vmem:[#allocation4 + $0x1c8] sm:$0xf0] }
  0xfc   :  { %2104 = vmatpush.bf16.msra.mxu1 %v3377_v47  ;;  %v1429_v33 = vpop.f32.mrf.mxu3  ;;  %v3881_v47 = vld [vmem:[#allocation4 + $0x114] sm:$0xf0] }
  0xfd   :  { %2068 = vmatpush.bf16.msrb.mxu2 %v3413_v44  ;;  %v3405_v49 = vor.u32 %v3881_v47, %v3404_v46  ;;  %v3878_v46 = vld [vmem:[#allocation4 + $0x104] sm:$0xf]  ;;  %v3398_v47 = vld [vmem:[#allocation4 + $0x108] sm:$0xf0] }
  0xfe   :  { %2091 = vmatpush.bf16.msra.mxu3 %v3313_v16  ;;  %v3337_v16 = vor.u32 %v3862_v29, %v3334_v34  ;;  %v3880_v34 = vld [vmem:[#allocation4 + $0x114] sm:$0xf] }
 0x100   :  { %2105 = vmatpush.bf16.msra.mxu1 %v3369_v60  ;;  %v3446_v60 = vld [vmem:[#allocation4 + $0x168] sm:$0xf0] }
 0x101   :  { %v1442_v43 = vpop.f32.mrf.mxu2  ;;  %2069 = vmatpush.bf16.msrb.mxu2 %v3405_v49  ;;  %v3401_v49 = vor.u32 %v3878_v46, %v3398_v47 }
 0x102   :  { %2092 = vmatpush.bf16.msra.mxu3 %v3305_v30  ;;  %v3397_v30 = vor.u32 %v3879_v25, %v3396_v53  ;;  %v3409_v43 = vor.u32 %v3880_v34, %v3406_v36 }
 0x104   :  { %2106 = vmatpush.bf16.msra.mxu1 %v3361_v5  ;;  %v1453_v50 = vpop.f32.mrf.mxu3  ;;  %v3438_v5 = vld [vmem:[#allocation4 + $0x158] sm:$0xf0] }
 0x105   :  { %v1454_v57 = vadd.f32 %v1453_v50, %v1441_v48  ;;  %2070 = vmatpush.bf16.msrb.mxu2 %v3397_v30  ;;  %v3441_v37 = vor.u32 %v3888_v4, %v3438_v5  ;;  %v3468_v50 = vld [vmem:[#allocation4 + $0x190] sm:$0xf]  ;;  %v3895_v30 = vld [vmem:[#allocation4 + $0x184] sm:$0xf0] }
 0x106   :  { %2093 = vmatpush.bf16.msra.mxu3 %v3297_v0 }
 0x107   :  { %v1640_v52 = vmax.f32 %v1454_v57, 0.0  ;;  %v3897_v57 = vld [vmem:[#allocation4 + $0x194] sm:$0xf0] }
 0x108   :  { %2107 = vmatpush.bf16.msra.mxu1 %v3353_v18  ;;  %v3501_v18 = vor.u32 %v3905_v31, %v3500_v45  ;;  %v3900_v31 = vld [vmem:[#allocation4 + $0x1b4] sm:$0xf] }
 0x109   :  { %v1644_v54 = vpack.c.bf16 %v1640_v52, %v1640_v52  ;;  %2115 = vmatpush.bf16.msra.mxu2 %v3457_v59  ;;  %v3469_v52 = vor.u32 %v3897_v57, %v3468_v50 }
 0x10a   :  { %2094 = vmatpush.bf16.msra.mxu3 %v3289_v15  ;;  %2078 = vmatpush.bf16.msrb.mxu0 %v3501_v18  ;;  %v3486_v18 = vld [vmem:[#allocation4 + $0x1b8] sm:$0xf0] }
 0x10b   :  { %2058 = vmatmul.bf16.vlgmr.msrb.gmra.mxu1 %v1644_v54  ;;  %v4173_v1 = vpop.f32.mrf.mxu0  ;;  %v3489_v19 = vor.u32 %v3900_v31, %v3486_v18  ;;  %v3918_v31 = vld [vmem:[%s4294_s5 + $0x40] sm:$0xff] }
 0x10c   :  { %2108 = vmatpush.bf16.msra.mxu1 %v3345_v28  ;;  %v1455_v0 = vpop.f32.mrf.mxu3  ;;  %v3901_v28 = vld [vmem:[#allocation4 + $0x1b4] sm:$0xf0] }
 0x10d   :  { %v3485_v33 = vor.u32 %v3901_v28, %v3484_v27  ;;  %v3894_v27 = vld [vmem:[#allocation4 + $0x184] sm:$0xf]  ;;  %v3462_v28 = vld [vmem:[#allocation4 + $0x188] sm:$0xf0] }
 0x10e   :  { %2095 = vmatpush.bf16.msra.mxu3 %v3281_v7  ;;  %v1466_v3 = vpop.f32.mrf.mxu1  ;;  %v3493_v7 = vor.u32 %v3903_v23, %v3492_v22  ;;  %v3896_v23 = vld [vmem:[#allocation4 + $0x194] sm:$0xf] }
 0x10f   :  { %v3473_v26 = vor.u32 %v3896_v23, %v3470_v24 }
 0x110   :  { %2109 = vmatpush.bf16.msra.mxu1 %v3337_v16  ;;  %2079 = vmatpush.bf16.msrb.mxu0 %v3493_v7  ;;  %v1467_v16 = vadd.f32 %v1466_v3, %v285_v39  ;;  %v3513_v3 = vor.u32 %v3906_v62, %v3510_v63  ;;  %v286_v7 = vperm.slane %v4149_v2, 3 }
 0x112   :  { %2096 = vmatpush.bf16.msra.mxu3 %v3273_v42  ;;  %v3899_v42 = vld [vmem:[#allocation4 + $0x1a4] sm:$0xf0] }
 0x113   :  { %v1494_v12 = vpop.f32.mrf.mxu0  ;;  %v3477_v51 = vor.u32 %v3899_v42, %v3476_v41 }
 0x114   :  { %2080 = vmatpush.bf16.msrb.mxu0 %v3485_v33 }
 0x115   :  { %2097 = vmatmul.bf16.vlgmr.msra.gmra.mxu3 %v4166_v38  ;;  %v3449_v38 = vor.u32 %v3890_v58, %v3446_v60  ;;  %v3518_v58 = vld [vmem:[#allocation4 + $0x1f8] sm:$0xf0] }
 0x116   :  { %v1468_v55 = vpop.f32.mrf.mxu1  ;;  %v3521_v59 = vor.u32 %v3908_v35, %v3518_v58 }
 0x117   :  { %2116 = vmatpush.bf16.msra.mxu2 %v3449_v38  ;;  %v3497_v55 = vor.u32 %v3902_v13, %v3494_v14  ;;  %v3922_v13 = vld [vmem:[%s4294_s5 + $0x60] sm:$0xff] }
 0x118   :  { %v1479_v11 = vpop.f32.mrf.mxu3  ;;  %2081 = vmatpush.bf16.msrb.mxu0 %v3477_v51 }
 0x119   :  { %v1505_v15 = vpop.f32.mrf.mxu2  ;;  %v1480_v48 = vadd.f32 %v1479_v11, %v1467_v16 }
 0x11b   :  { %2117 = vmatpush.bf16.msra.mxu2 %v3441_v37  ;;  %2110 = vmatmul.bf16.vlgmr.msra.gmra.mxu1 %v1644_v54  ;;  %v1544_v6 = vpop.f32.mrf.mxu0  ;;  %v1493_v25 = vadd.f32 %v4173_v1, %v1480_v48  ;;  %v3460_v54 = vld [vmem:[#allocation4 + $0x180] sm:$0xf]  ;;  %v3904_v1 = vld [vmem:[#allocation4 + $0x1d4] sm:$0xf] }
 0x11c   :  { %2082 = vmatpush.bf16.msrb.mxu0 %v3469_v52  ;;  %v3461_v56 = vor.u32 %v3895_v30, %v3460_v54  ;;  %v3505_v10 = vor.u32 %v3904_v1, %v3502_v8  ;;  %v3925_v1 = vld [vmem:[%s4294_s5 + $0x78] sm:$0xff]  ;;  %v3912_v8 = vld [vmem:[%s4294_s5 + $0x10] sm:$0xff] }
 0x11d   :  { %v1506_v60 = vadd.f32 %v1505_v15, %v1493_v25  ;;  %2290 = vmatpush.bf16.msrb.mxu1 %v3925_v1 }
 0x11f   :  { %2118 = vmatpush.bf16.msra.mxu2 %v3433_v17 }
 0x120   :  { %v1481_v29 = vpop.f32.mrf.mxu3  ;;  %2083 = vmatpush.bf16.msrb.mxu0 %v3461_v56 }
 0x121   :  { %v1507_v40 = vpop.f32.mrf.mxu2 }
 0x123   :  { %2119 = vmatpush.bf16.msra.mxu2 %v3425_v21  ;;  %v1546_v44 = vpop.f32.mrf.mxu0  ;;  %v3478_v21 = vld [vmem:[#allocation4 + $0x1a8] sm:$0xf0] }
 0x124   :  { %2128 = vmatpush.bf16.msra.mxu0 %v3521_v59  ;;  %v3481_v22 = vor.u32 %v3898_v20, %v3478_v21  ;;  %v3932_v20 = vld [vmem:[%s4296_s7 + $0x30] sm:$0xff] }
 0x127   :  { %2120 = vmatpush.bf16.msra.mxu2 %v3417_v32  ;;  %v3465_v32 = vor.u32 %v3894_v27, %v3462_v28 }
 0x128   :  { %2129 = vmatpush.bf16.msra.mxu0 %v3513_v3  ;;  %v3916_v3 = vld [vmem:[%s4294_s5 + $0x30] sm:$0xff] }
 0x12b   :  { %2121 = vmatpush.bf16.msra.mxu2 %v3409_v43 }
 0x12c   :  { %v1518_v53 = vpop.f32.mrf.mxu1  ;;  %2130 = vmatpush.bf16.msra.mxu0 %v3505_v10  ;;  %v3911_v10 = vld [vmem:[%s4294_s5 + $0x8] sm:$0xff] }
 0x12d   :  { %v1519_v0 = vadd.f32 %v1518_v53, %v1506_v60  ;;  %v1711_v53 = vld [vmem:[%s4293_s4] sm:$0x3] }
 0x12e   :  { %v1713_v25 = vperm.slane %v1711_v53, 0  ;;  %v1714_v60 = vperm.slane %v1711_v53, 1 }
 0x12f   :  { %2122 = vmatpush.bf16.msra.mxu2 %v3401_v49 }
 0x130   :  { %v1570_v61 = vpop.f32.mrf.mxu0  ;;  %2131 = vmatpush.bf16.msra.mxu0 %v3497_v55  ;;  %v3920_v55 = vld [vmem:[%s4294_s5 + $0x50] sm:$0xff] }
 0x134   :  { %v1520_v38 = vpop.f32.mrf.mxu1  ;;  %2132 = vmatpush.bf16.msra.mxu0 %v3489_v19  ;;  %v3933_v19 = vld [vmem:[%s4296_s7 + $0x38] sm:$0xff] }
 0x138   :  { %v1531_v4 = vpop.f32.mrf.mxu3  ;;  %v1572_v12 = vpop.f32.mrf.mxu0  ;;  %2133 = vmatpush.bf16.msra.mxu0 %v3481_v22  ;;  %v3931_v22 = vld [vmem:[%s4296_s7 + $0x28] sm:$0xff] }
 0x139   :  { %v1532_v5 = vadd.f32 %v1531_v4, %v1519_v0  ;;  %v1557_v37 = vpop.f32.mrf.mxu2  ;;  %v3917_v0 = vld [vmem:[%s4294_s5 + $0x38] sm:$0xff]  ;;  %v3915_v4 = vld [vmem:[%s4294_s5 + $0x28] sm:$0xff]  ;;  %v3910_v12 = vld [vmem:[%s4294_s5] sm:$0xff] }
 0x13a   :  { %v1558_v29 = vadd.f32 %v1557_v37, %v286_v7  ;;  %2277 = vmatpush.bf16.msrb.mxu3 %v3917_v0  ;;  %v3913_v37 = vld [vmem:[%s4294_s5 + $0x18] sm:$0xff]  ;;  %v3950_v0 = vld [vmem:[%s4299_s10] ss:$0 sm:$0xff] }
 0x13b   :  { %v1545_v9 = vadd.f32 %v1544_v6, %v1532_v5  ;;  %v3914_v5 = vld [vmem:[%s4294_s5 + $0x20] sm:$0xff] }
 0x13c   :  { %2134 = vmatpush.bf16.msra.mxu0 %v3473_v26  ;;  %v1571_v33 = vadd.f32 %v1570_v61, %v1558_v29  ;;  %v3930_v26 = vld [vmem:[%s4296_s7 + $0x20] sm:$0xff] }
 0x13d   :  { %v1641_v11 = vmax.f32 %v1545_v9, 0.0  ;;  %v3924_v9 = vld [vmem:[%s4294_s5 + $0x70] sm:$0xff] }
 0x13e   :  { %2278 = vmatpush.bf16.msrb.mxu3 %v3916_v3  ;;  %2291 = vmatpush.bf16.msrb.mxu1 %v3924_v9 }
 0x13f   :  { %v1645_v15 = vpack.c.bf16 %v1641_v11, %v1641_v11  ;;  %v3923_v11 = vld [vmem:[%s4294_s5 + $0x68] sm:$0xff] }
 0x140   :  { %v1533_v17 = vpop.f32.mrf.mxu3  ;;  %2135 = vmatpush.bf16.msra.mxu0 %v3465_v32 }
 0x141   :  { %2071 = vmatmul.bf16.vlgmr.msrb.gmra.mxu2 %v1645_v15  ;;  %v1559_v45 = vpop.f32.mrf.mxu2 }
 0x142   :  { %2279 = vmatpush.bf16.msrb.mxu3 %v3915_v4  ;;  %2292 = vmatpush.bf16.msrb.mxu1 %v3923_v11  ;;  %v3919_v45 = vld [vmem:[%s4294_s5 + $0x48] sm:$0xff] }
 0x143   :  { %2373 = vmatpush.bf16.msrb.mxu2 %v3933_v19 }
 0x146   :  { %2280 = vmatpush.bf16.msrb.mxu3 %v3914_v5  ;;  %2293 = vmatpush.bf16.msrb.mxu1 %v3922_v13 }
 0x147   :  { %2374 = vmatpush.bf16.msrb.mxu2 %v3932_v20 }
 0x14a   :  { %2281 = vmatpush.bf16.msrb.mxu3 %v3913_v37 }
 0x14b   :  { %2375 = vmatpush.bf16.msrb.mxu2 %v3931_v22 }
 0x14c   :  { %v1583_v6 = vpop.f32.mrf.mxu1 }
 0x14d   :  { %v1584_v36 = vadd.f32 %v1583_v6, %v1571_v33 }
 0x14e   :  { %2282 = vmatpush.bf16.msrb.mxu3 %v3912_v8 }
 0x14f   :  { %2376 = vmatpush.bf16.msrb.mxu2 %v3930_v26 }
 0x150   :  { %v1622_v34 = vpop.f32.mrf.mxu0 }
 0x151   :  { %2123 = vmatmul.bf16.vlgmr.msra.gmra.mxu2 %v1645_v15  ;;  %v3921_v15 = vld [vmem:[%s4294_s5 + $0x58] sm:$0xff] }
 0x152   :  { %2283 = vmatpush.bf16.msrb.mxu3 %v3911_v10  ;;  %2294 = vmatpush.bf16.msrb.mxu1 %v3921_v15 }
 0x154   :  { %v1585_v39 = vpop.f32.mrf.mxu1 }
 0x156   :  { %2284 = vmatpush.bf16.msrb.mxu3 %v3910_v12  ;;  %2295 = vmatpush.bf16.msrb.mxu1 %v3920_v55 }
 0x158   :  { %v1596_v40 = vpop.f32.mrf.mxu3  ;;  %v1624_v51 = vpop.f32.mrf.mxu0 }
 0x159   :  { %v1597_v41 = vadd.f32 %v1596_v40, %v1584_v36  ;;  %v1609_v42 = vpop.f32.mrf.mxu2  ;;  %v3929_v40 = vld [vmem:[%s4296_s7 + $0x18] sm:$0xff] }
 0x15a   :  { %2296 = vmatpush.bf16.msrb.mxu1 %v3919_v45  ;;  %2377 = vmatpush.bf16.msrb.mxu2 %v3929_v40  ;;  %v3941_v51 = vld [vmem:[%s4298_s9 + $0x38] sm:$0xff] }
 0x15b   :  { %v1610_v43 = vadd.f32 %v1609_v42, %v1597_v41  ;;  %v3928_v41 = vld [vmem:[%s4296_s7 + $0x10] sm:$0xff]  ;;  %v3927_v42 = vld [vmem:[%s4296_s7 + $0x8] sm:$0xff] }
 0x15c   :  { %v1635_v16 = vpop.f32.mrf.mxu1 }
 0x15d   :  { %v1623_v2 = vadd.f32 %v1622_v34, %v1610_v43  ;;  %v3926_v43 = vld [vmem:[%s4296_s7] sm:$0xff] }
 0x15e   :  { %2297 = vmatpush.bf16.msrb.mxu1 %v3918_v31  ;;  %2378 = vmatpush.bf16.msrb.mxu2 %v3928_v41 }
 0x15f   :  { %v1636_v44 = vadd.f32 %v1635_v16, %v1623_v2  ;;  %v3940_v2 = vld [vmem:[%s4298_s9 + $0x30] sm:$0xff]  ;;  %v3939_v16 = vld [vmem:[%s4298_s9 + $0x28] sm:$0xff] }
 0x160   :  { %v1598_v46 = vpop.f32.mrf.mxu3 }
 0x161   :  { %v1611_v47 = vpop.f32.mrf.mxu2  ;;  %v1642_v48 = vmax.f32 %v1636_v44, 0.0  ;;  %v3938_v44 = vld [vmem:[%s4298_s9 + $0x20] sm:$0xff] }
 0x162   :  { %2379 = vmatpush.bf16.msrb.mxu2 %v3927_v42  ;;  %v3937_v47 = vld [vmem:[%s4298_s9 + $0x18] sm:$0xff] }
 0x163   :  { %v1646_v49 = vpack.c.bf16 %v1642_v48, %v1642_v48  ;;  %v3936_v48 = vld [vmem:[%s4298_s9 + $0x10] sm:$0xff] }
 0x164   :  { %v1637_v50 = vpop.f32.mrf.mxu1 }
 0x165   :  { %2084 = vmatmul.bf16.vlgmr.msrb.gmra.mxu0 %v1646_v49 }
 0x166   :  { %2380 = vmatpush.bf16.msrb.mxu2 %v3926_v43  ;;  %2456 = vmatpush.bf16.msrb.mxu0 %v3941_v51 }
 0x16a   :  { %2457 = vmatpush.bf16.msrb.mxu0 %v3940_v2 }
 0x16e   :  { %2458 = vmatpush.bf16.msrb.mxu0 %v3939_v16 }
 0x172   :  { %2459 = vmatpush.bf16.msrb.mxu0 %v3938_v44 }
 0x175   :  { %2136 = vmatmul.bf16.vlgmr.msra.gmra.mxu0 %v1646_v49  ;;  %v3948_v49 = vld [vmem:[%s4295_s6] ss:$0 sm:$0xff] }
 0x176   :  { %2460 = vmatpush.bf16.msrb.mxu0 %v3937_v47 }
 0x178   :  { %v2046_v57 = vpop.f32.mrf.mxu3 }
 0x179   :  { %v2047_v54 = vadd.f32 %v2046_v57, %v1713_v25 }
 0x17a   :  { %2461 = vmatpush.bf16.msrb.mxu0 %v3936_v48 }
 0x180   :  { %v2048_v52 = vpop.f32.mrf.mxu3 }
 0x188   :  { %v2059_v30 = vpop.f32.mrf.mxu1 }
 0x189   :  { %v2060_v35 = vadd.f32 %v2059_v30, %v2047_v54 }
 0x190   :  { %v2061_v58 = vpop.f32.mrf.mxu1 }
 0x191   :  { %v3949_v58 = vld [vmem:[%s4297_s8] ss:$0 sm:$0xff] }
 0x198   :  { %v2098_v56 = vpop.f32.mrf.mxu3  ;;  %v2111_v62 = vpop.f32.mrf.mxu1 }
 0x199   :  { %v2099_v61 = vadd.f32 %v2098_v56, %v1714_v60  ;;  %v3935_v56 = vld [vmem:[%s4298_s9 + $0x8] sm:$0xff] }
 0x19a   :  { %2462 = vmatpush.bf16.msrb.mxu0 %v3935_v56 }
 0x19b   :  { %v2112_v63 = vadd.f32 %v2111_v62, %v2099_v61 }
 0x1a0   :  { %v2100_v59 = vpop.f32.mrf.mxu3  ;;  %v2113_v38 = vpop.f32.mrf.mxu1 }
 0x1c4   :  { %v2072_v14 = vpop.f32.mrf.mxu2 }
 0x1c5   :  { %v2073_v23 = vadd.f32 %v2072_v14, %v2060_v35  ;;  %v3934_v35 = vld [vmem:[%s4298_s9] sm:$0xff] }
 0x1c6   :  { %2463 = vmatpush.bf16.msrb.mxu0 %v3934_v35 }
 0x1cc   :  { %v2074_v17 = vpop.f32.mrf.mxu2 }
 0x1d4   :  { %v2124_v18 = vpop.f32.mrf.mxu2 }
 0x1d5   :  { %v2125_v6 = vadd.f32 %v2124_v18, %v2112_v63 }
 0x1dc   :  { %v2126_v21 = vpop.f32.mrf.mxu2 }
 0x1e2   :  { %v2085_v24 = vpop.f32.mrf.mxu0 }
 0x1e3   :  { %v2086_v7 = vadd.f32 %v2085_v24, %v2073_v23 }
 0x1e5   :  { %v2141_v27 = vmax.f32 %v2086_v7, 0.0 }
 0x1e7   :  { %v2143_v28 = vpack.c.bf16 %v2141_v27, %v2141_v27 }
 0x1e9   :  { %2285 = vmatmul.bf16.vlgmr.msrb.gmra.mxu3 %v2143_v28 }
 0x1ea   :  { %v2087_v29 = vpop.f32.mrf.mxu0 }
 0x1f2   :  { %v2137_v32 = vpop.f32.mrf.mxu0 }
 0x1f3   :  { %v2138_v33 = vadd.f32 %v2137_v32, %v2125_v6 }
 0x1f5   :  { %v2142_v34 = vmax.f32 %v2138_v33, 0.0 }
 0x1f7   :  { %v2144_v36 = vpack.c.bf16 %v2142_v34, %v2142_v34 }
 0x1f9   :  { %2298 = vmatmul.bf16.vlgmr.msrb.gmra.mxu1 %v2144_v36 }
 0x1fa   :  { %v2139_v39 = vpop.f32.mrf.mxu0 }
 0x26c   :  { %v2286_v46 = vpop.f32.mrf.mxu3 }
 0x26d   :  { %v2287_v57 = vadd.f32 %v3948_v49, %v2286_v46 }
 0x274   :  { %v2288_v50 = vpop.f32.mrf.mxu3 }
 0x276   :  { %v2299_v52 = vpop.f32.mrf.mxu1 }
 0x277   :  { %v2300_v53 = vadd.f32 %v2299_v52, %v2287_v57 }
 0x279   :  { %v2303_v25 = vmax.f32 %v2300_v53, 0.0 }
 0x27b   :  { %v2304_v54 = vpack.c.bf16 %v2303_v25, %v2303_v25 }
 0x27d   :  { %2381 = vmatmul.bf16.vlgmr.msrb.gmra.mxu2 %v2304_v54 }
 0x27e   :  { %v2301_v30 = vpop.f32.mrf.mxu1 }
 0x300   :  { %v2382_v59 = vpop.f32.mrf.mxu2 }
 0x301   :  { %v2383_v60 = vadd.f32 %v3949_v58, %v2382_v59 }
 0x303   :  { %v2386_v61 = vmax.f32 %v2383_v60, 0.0 }
 0x305   :  { %v2387_v62 = vpack.c.bf16 %v2386_v61, %v2386_v61 }
 0x307   :  { %2464 = vmatmul.bf16.vlgmr.msrb.gmra.mxu0 %v2387_v62 }
 0x308   :  { %v2384_v63 = vpop.f32.mrf.mxu2 }
 0x384   :  { %v2465_v38 = vpop.f32.mrf.mxu0 }
 0x385   :  { %v2466_v3 = vadd.f32 %v3950_v0, %v2465_v38 }
 0x387   :  { %3951 = vtanh.f32 %v2466_v3 }
 0x38c   :  { %v2467_v4 = vpop.f32.mrf.mxu0 }
 0x38d   :  { %v3952_v5 = vpop.eup %3951 }
 0x38e   :  { %v2470_v37 = vpack.c.bf16 %v3952_v5, %v3952_v5 }
 0x390   :  { %2471 = vst [vmem:[%s4300_s11] sm:$0xf] %v2470_v37 }
 0x391   :  { %2476 = vsyncpa [#allocation3], 1 }
 0x392   :  { %2477 = vsyncpa [#allocation5], 1 }

</bundles_post_ra>
